<compile_context>
chip_gen: v5e
topology: v5e:2x2
jax: 0.10.0
libtpu: 0.0.40
codegen_flags: <defaults>
</compile_context>

<pallas_src>
import jax
import jax.numpy as jnp
from jax.experimental import pallas as pl
from jax.experimental.pallas import tpu as pltpu


def _round_up(x, m):
    return ((x + m - 1) // m) * m


def _pad_to(a, shape):
    pads = [(0, t - s) for s, t in zip(a.shape, shape)]
    return jnp.pad(a, pads)


def make_decoder_kernel(n_layers, h_pad):
    H = h_pad

    def kernel(*refs):
        # inputs:  emb, h_in, c_in, [W_l, b_l] * n_layers, w_fc_tile, b_fc_tile
        # outputs: pred_tile, h_out, c_out
        # scratch: x_top (top-layer hidden, carried across FC tiles)
        emb_ref, h_ref, c_ref = refs[0], refs[1], refs[2]
        layer_refs = refs[3:3 + 2 * n_layers]
        wfc_ref, bfc_ref = refs[3 + 2 * n_layers], refs[4 + 2 * n_layers]
        pred_ref = refs[5 + 2 * n_layers]
        hout_ref = refs[6 + 2 * n_layers]
        cout_ref = refs[7 + 2 * n_layers]
        x_scr = refs[8 + 2 * n_layers]

        j = pl.program_id(0)

        # Recurrent part: run once (first vocab tile), keep result in VMEM scratch.
        @pl.when(j == 0)
        def _():
            x = emb_ref[...]  # (B_pad, E_pad) f32
            for l in range(n_layers):
                w = layer_refs[2 * l][...]       # (in_pad + H_pad, 4*H_pad) bf16
                b = layer_refs[2 * l + 1][...]   # (1, 4*H_pad) f32
                h_prev = h_ref[l]                # (B_pad, H_pad) f32
                c_prev = c_ref[l]                # (B_pad, H_pad) f32

                # Single fused MXU matmul per layer on [x, h_prev].
                xh = jnp.concatenate(
                    [x.astype(jnp.bfloat16), h_prev.astype(jnp.bfloat16)], axis=1)
                gates = jnp.dot(xh, w, preferred_element_type=jnp.float32) + b

                i_g = jax.nn.sigmoid(gates[:, 0 * H:1 * H])
                f_g = jax.nn.sigmoid(gates[:, 1 * H:2 * H])
                g_g = jnp.tanh(gates[:, 2 * H:3 * H])
                o_g = jax.nn.sigmoid(gates[:, 3 * H:4 * H])

                c_new = f_g * c_prev + i_g * g_g
                h_new = o_g * jnp.tanh(c_new)

                hout_ref[l] = h_new
                cout_ref[l] = c_new
                x = h_new  # eval-mode inter-layer dropout == identity

            x_scr[...] = x

        # Vocab projection for this output tile (lane-dense, multiple of 128 wide).
        x_top = x_scr[...].astype(jnp.bfloat16)
        pred_ref[...] = (
            jnp.dot(x_top, wfc_ref[...], preferred_element_type=jnp.float32)
            + bfc_ref[...]
        )

    return kernel


def decoder_forward(params, trg, hidden, cell, *, fc_tile=512):
    """Equivalent of Decoder.forward (eval mode).

    trg:    (B,)  int32 token ids
    hidden: (L, B, H) float32
    cell:   (L, B, H) float32
    returns (prediction (B, output_dim), hidden (L, B, H), cell (L, B, H))
    """
    n_layers, B, H = hidden.shape
    emb_table = params["embedding"]            # (output_dim, E)
    V, E = emb_table.shape

    # Hardware-tile padding.
    B_pad = _round_up(max(B, 8), 8)
    E_pad = _round_up(E, 128)
    H_pad = _round_up(H, 128)
    V_pad = _round_up(V, 128)

    # FC tile size over the vocab dim (lane-dense, divides V_pad).
    tile_n = 128
    for t in (2048, 1024, 512, 256, 128):
        if t <= max(fc_tile, 128) and V_pad % t == 0:
            tile_n = t
            break
    n_tiles = V_pad // tile_n

    # ---- glue: embedding gather (eval-mode dropout == identity) + padding ----
    emb = jnp.take(emb_table, trg, axis=0).astype(jnp.float32)       # (B, E)
    emb_p = _pad_to(emb, (B_pad, E_pad))
    h_p = _pad_to(hidden.astype(jnp.float32), (n_layers, B_pad, H_pad))
    c_p = _pad_to(cell.astype(jnp.float32), (n_layers, B_pad, H_pad))

    def const_spec(shape):
        nd = len(shape)
        return pl.BlockSpec(shape, lambda j, _nd=nd: (0,) * _nd)

    kernel_inputs = [emb_p, h_p, c_p]
    in_specs = [const_spec(emb_p.shape), const_spec(h_p.shape), const_spec(c_p.shape)]

    # ---- glue: per-layer fused, gate-padded, pre-transposed bf16 weights ----
    for l in range(n_layers):
        in_l = E if l == 0 else H
        in_pad = E_pad if l == 0 else H_pad
        w_ih = params[f"w_ih_{l}"].reshape(4, H, in_l)    # gate-major (i,f,g,o)
        w_hh = params[f"w_hh_{l}"].reshape(4, H, H)
        w_ih_p = jnp.pad(w_ih, ((0, 0), (0, H_pad - H), (0, in_pad - in_l)))
        w_hh_p = jnp.pad(w_hh, ((0, 0), (0, H_pad - H), (0, H_pad - H)))
        w_x = jnp.transpose(w_ih_p, (2, 0, 1)).reshape(in_pad, 4 * H_pad)
        w_h = jnp.transpose(w_hh_p, (2, 0, 1)).reshape(H_pad, 4 * H_pad)
        w_l = jnp.concatenate([w_x, w_h], axis=0).astype(jnp.bfloat16)  # (in_pad+H_pad, 4H_pad)

        b = (params[f"b_ih_{l}"] + params[f"b_hh_{l}"]).reshape(4, H)
        b_p = jnp.pad(b, ((0, 0), (0, H_pad - H))).reshape(1, 4 * H_pad).astype(jnp.float32)

        kernel_inputs += [w_l, b_p]
        in_specs += [const_spec(w_l.shape), const_spec(b_p.shape)]

    # ---- glue: FC weight (bf16, padded, pre-transposed) tiled over vocab ----
    w_fc_t = jnp.pad(params["w_fc"].T, ((0, H_pad - H), (0, V_pad - V))).astype(jnp.bfloat16)
    b_fc = jnp.pad(params["b_fc"], (0, V_pad - V)).reshape(1, V_pad).astype(jnp.float32)
    kernel_inputs += [w_fc_t, b_fc]
    in_specs += [
        pl.BlockSpec((H_pad, tile_n), lambda j: (0, j)),
        pl.BlockSpec((1, tile_n), lambda j: (0, j)),
    ]

    out_shapes = (
        jax.ShapeDtypeStruct((B_pad, V_pad), jnp.float32),
        jax.ShapeDtypeStruct((n_layers, B_pad, H_pad), jnp.float32),
        jax.ShapeDtypeStruct((n_layers, B_pad, H_pad), jnp.float32),
    )
    out_specs = (
        pl.BlockSpec((B_pad, tile_n), lambda j: (0, j)),
        const_spec((n_layers, B_pad, H_pad)),
        const_spec((n_layers, B_pad, H_pad)),
    )

    # Explicit scoped-VMEM limit sized from the resident footprint (+ double-buffered
    # FC tiles / pred tile / resident outputs / scratch), clamped to 64 MiB (v7x physical).
    resident = sum(int(x.size) * x.dtype.itemsize for x in kernel_inputs[:-2])
    resident += 2 * (H_pad * tile_n * 2 + tile_n * 4 + B_pad * tile_n * 4)
    resident += 2 * n_layers * B_pad * H_pad * 4 * 2
    resident += B_pad * H_pad * 4
    vmem_limit = int(min(max(2 * resident + (8 << 20), 32 << 20), 64 << 20))

    kernel = make_decoder_kernel(n_layers, H_pad)
    pred_p, h_out_p, c_out_p = pl.pallas_call(
        kernel,
        grid=(n_tiles,),
        in_specs=in_specs,
        out_specs=out_specs,
        out_shape=out_shapes,
        scratch_shapes=[pltpu.VMEM((B_pad, H_pad), jnp.float32)],
        compiler_params=pltpu.CompilerParams(
            # The top-layer hidden state is carried in scratch across FC tiles,
            # so the vocab-tile axis must be sequential ("arbitrary").
            dimension_semantics=("arbitrary",),
            vmem_limit_bytes=vmem_limit,
        ),
    )(*kernel_inputs)

    # Strip the padding.
    return pred_p[:B, :V], h_out_p[:, :B, :H], c_out_p[:, :B, :H]


def init_params(key, output_dim, emb_dim, hid_dim, n_layers):
    keys = jax.random.split(key, 4 * n_layers + 3)
    params = {}
    params["embedding"] = jax.random.normal(keys[0], (output_dim, emb_dim), jnp.float32) * 0.1
    ki = 1
    for l in range(n_layers):
        in_l = emb_dim if l == 0 else hid_dim
        params[f"w_ih_{l}"] = jax.random.normal(keys[ki + 0], (4 * hid_dim, in_l), jnp.float32) * 0.1
        params[f"w_hh_{l}"] = jax.random.normal(keys[ki + 1], (4 * hid_dim, hid_dim), jnp.float32) * 0.1
        params[f"b_ih_{l}"] = jax.random.normal(keys[ki + 2], (4 * hid_dim,), jnp.float32) * 0.1
        params[f"b_hh_{l}"] = jax.random.normal(keys[ki + 3], (4 * hid_dim,), jnp.float32) * 0.1
        ki += 4
    params["w_fc"] = jax.random.normal(keys[ki], (output_dim, hid_dim), jnp.float32) * 0.1
    params["b_fc"] = jax.random.normal(keys[ki + 1], (output_dim,), jnp.float32) * 0.1
    return params


if __name__ == "__main__":
    # Small shapes consistent with the module's forward (deliberately NOT multiples of
    # the hardware tiles, to exercise the padding path; vocab pads to 384 -> 3 FC tiles).
    OUTPUT_DIM = 300   # vocab size
    EMB_DIM = 48
    HID_DIM = 96
    N_LAYERS = 2
    BATCH = 5

    key = jax.random.PRNGKey(0)
    k_param, k_trg, k_h, k_c = jax.random.split(key, 4)

    params = init_params(k_param, OUTPUT_DIM, EMB_DIM, HID_DIM, N_LAYERS)
    trg = jax.random.randint(k_trg, (BATCH,), 0, OUTPUT_DIM, dtype=jnp.int32)
    hidden = jax.random.normal(k_h, (N_LAYERS, BATCH, HID_DIM), jnp.float32)
    cell = jax.random.normal(k_c, (N_LAYERS, BATCH, HID_DIM), jnp.float32)

    pred, h_out, c_out = decoder_forward(params, trg, hidden, cell)
    jax.block_until_ready((pred, h_out, c_out))

    # Sanity check against a pure-JAX f32 reference of the same math.
    def ref_forward(params, trg, hidden, cell):
        H = HID_DIM
        x = jnp.take(params["embedding"], trg, axis=0)
        h_list, c_list = [], []
        for l in range(N_LAYERS):
            hp, cp = hidden[l], cell[l]
            gates = x @ params[f"w_ih_{l}"].T + hp @ params[f"w_hh_{l}"].T \
                    + params[f"b_ih_{l}"] + params[f"b_hh_{l}"]
            i = jax.nn.sigmoid(gates[:, :H]); f = jax.nn.sigmoid(gates[:, H:2 * H])
            g = jnp.tanh(gates[:, 2 * H:3 * H]); o = jax.nn.sigmoid(gates[:, 3 * H:])
            cn = f * cp + i * g
            hn = o * jnp.tanh(cn)
            h_list.append(hn); c_list.append(cn); x = hn
        pred = x @ params["w_fc"].T + params["b_fc"]
        return pred, jnp.stack(h_list), jnp.stack(c_list)

    rp, rh, rc = ref_forward(params, trg, hidden, cell)
    # Kernel uses bf16 weights / bf16 matmul inputs with f32 accumulation -> looser tol.
    assert jnp.allclose(pred, rp, atol=5e-2, rtol=5e-2), "prediction mismatch"
    assert jnp.allclose(h_out, rh, atol=5e-2, rtol=5e-2), "hidden mismatch"
    assert jnp.allclose(c_out, rc, atol=5e-2, rtol=5e-2), "cell mismatch"

    print("KERNEL_OK")
</pallas_src>

<mosaic_0001>
module attributes {stable_mosaic.version = 11 : i64} {
  func.func @kernel(%arg0: i32, %arg1: memref<8x128xf32, #tpu.memory_space<vmem>>, %arg2: memref<2x8x128xf32, #tpu.memory_space<vmem>>, %arg3: memref<2x8x128xf32, #tpu.memory_space<vmem>>, %arg4: memref<256x512xbf16, #tpu.memory_space<vmem>>, %arg5: memref<1x512xf32, #tpu.memory_space<vmem>>, %arg6: memref<256x512xbf16, #tpu.memory_space<vmem>>, %arg7: memref<1x512xf32, #tpu.memory_space<vmem>>, %arg8: memref<128x128xbf16, #tpu.memory_space<vmem>>, %arg9: memref<1x128xf32, #tpu.memory_space<vmem>>, %arg10: memref<8x128xf32, #tpu.memory_space<vmem>>, %arg11: memref<2x8x128xf32, #tpu.memory_space<vmem>>, %arg12: memref<2x8x128xf32, #tpu.memory_space<vmem>>, %arg13: memref<8x128xf32, #tpu.memory_space<vmem>>) attributes {dimension_semantics = [#tpu.dimension_semantics<arbitrary>], iteration_bounds = array<i64: 3>, scalar_prefetch = 0 : i64, scratch_operands = 1 : i64, tpu.core_type = #tpu.core_type<tc>, window_params = [{pipeline_mode = #tpu.pipeline_mode<synchronous>, transform_indices = @transform_0, window_bounds = array<i64: 8, 128>}, {pipeline_mode = #tpu.pipeline_mode<synchronous>, transform_indices = @transform_1, window_bounds = array<i64: 2, 8, 128>}, {pipeline_mode = #tpu.pipeline_mode<synchronous>, transform_indices = @transform_2, window_bounds = array<i64: 2, 8, 128>}, {pipeline_mode = #tpu.pipeline_mode<synchronous>, transform_indices = @transform_3, window_bounds = array<i64: 256, 512>}, {pipeline_mode = #tpu.pipeline_mode<synchronous>, transform_indices = @transform_4, window_bounds = array<i64: 1, 512>}, {pipeline_mode = #tpu.pipeline_mode<synchronous>, transform_indices = @transform_5, window_bounds = array<i64: 256, 512>}, {pipeline_mode = #tpu.pipeline_mode<synchronous>, transform_indices = @transform_6, window_bounds = array<i64: 1, 512>}, {transform_indices = @transform_7, window_bounds = array<i64: 128, 128>}, {transform_indices = @transform_8, window_bounds = array<i64: 1, 128>}, {transform_indices = @transform_9, window_bounds = array<i64: 8, 128>}, {pipeline_mode = #tpu.pipeline_mode<synchronous>, transform_indices = @transform_10, window_bounds = array<i64: 2, 8, 128>}, {pipeline_mode = #tpu.pipeline_mode<synchronous>, transform_indices = @transform_11, window_bounds = array<i64: 2, 8, 128>}]} {
    %c0_i32 = arith.constant 0 : i32
    %0 = arith.cmpi eq, %arg0, %c0_i32 : i32
    %1 = arith.extui %0 : i1 to i32
    %c0_i32_0 = arith.constant 0 : i32
    %2 = arith.cmpi ne, %1, %c0_i32_0 : i32
    scf.if %2 {
      %c0_8 = arith.constant 0 : index
      %c0_9 = arith.constant 0 : index
      %11 = vector.load %arg1[%c0_8, %c0_9] : memref<8x128xf32, #tpu.memory_space<vmem>>, vector<8x128xf32>
      %c0_10 = arith.constant 0 : index
      %c0_11 = arith.constant 0 : index
      %12 = vector.load %arg4[%c0_10, %c0_11] : memref<256x512xbf16, #tpu.memory_space<vmem>>, vector<256x512xbf16>
      %c0_12 = arith.constant 0 : index
      %c0_13 = arith.constant 0 : index
      %13 = vector.load %arg5[%c0_12, %c0_13] : memref<1x512xf32, #tpu.memory_space<vmem>>, vector<1x512xf32>
      %c0_14 = arith.constant 0 : index
      %c0_15 = arith.constant 0 : index
      %c0_16 = arith.constant 0 : index
      %14 = vector.load %arg2[%c0_14, %c0_15, %c0_16] : memref<2x8x128xf32, #tpu.memory_space<vmem>>, vector<1x8x128xf32>
      %15 = vector.shape_cast %14 : vector<1x8x128xf32> to vector<8x128xf32>
      %c0_17 = arith.constant 0 : index
      %c0_18 = arith.constant 0 : index
      %c0_19 = arith.constant 0 : index
      %16 = vector.load %arg3[%c0_17, %c0_18, %c0_19] : memref<2x8x128xf32, #tpu.memory_space<vmem>>, vector<1x8x128xf32>
      %17 = vector.shape_cast %16 : vector<1x8x128xf32> to vector<8x128xf32>
      %18 = arith.truncf %11 : vector<8x128xf32> to vector<8x128xbf16>
      %19 = arith.truncf %15 : vector<8x128xf32> to vector<8x128xbf16>
      %20 = tpu.concatenate %18, %19 in 1 : vector<8x128xbf16>, vector<8x128xbf16> -> vector<8x256xbf16>
      %cst_20 = arith.constant dense<0.000000e+00> : vector<8x512xf32>
      %21 = tpu.matmul %20, %12, %cst_20 {dimension_numbers = #tpu.dot_dimension_numbers<[1], [0], [0], [1], [0, 0, 1, 1], [], []>} : vector<8x256xbf16>, vector<256x512xbf16>, vector<8x512xf32> -> vector<8x512xf32>
      %22 = vector.broadcast %13 : vector<1x512xf32> to vector<8x512xf32>
      %23 = arith.addf %21, %22 : vector<8x512xf32>
      %24 = vector.extract_strided_slice %23 {offsets = [0, 0], sizes = [8, 128], strides = [1, 1]} : vector<8x512xf32> to vector<8x128xf32>
      %25 = arith.negf %24 : vector<8x128xf32>
      %26 = math.exp %25 : vector<8x128xf32>
      %cst_21 = arith.constant 1.000000e+00 : f32
      %27 = vector.broadcast %cst_21 : f32 to vector<8x128xf32>
      %28 = arith.addf %27, %26 : vector<8x128xf32>
      %29 = arith.divf %27, %28 : vector<8x128xf32>
      %30 = vector.extract_strided_slice %23 {offsets = [0, 128], sizes = [8, 128], strides = [1, 1]} : vector<8x512xf32> to vector<8x128xf32>
      %31 = arith.negf %30 : vector<8x128xf32>
      %32 = math.exp %31 : vector<8x128xf32>
      %cst_22 = arith.constant 1.000000e+00 : f32
      %33 = vector.broadcast %cst_22 : f32 to vector<8x128xf32>
      %34 = arith.addf %33, %32 : vector<8x128xf32>
      %35 = arith.divf %33, %34 : vector<8x128xf32>
      %36 = vector.extract_strided_slice %23 {offsets = [0, 256], sizes = [8, 128], strides = [1, 1]} : vector<8x512xf32> to vector<8x128xf32>
      %37 = math.tanh %36 : vector<8x128xf32>
      %38 = vector.extract_strided_slice %23 {offsets = [0, 384], sizes = [8, 128], strides = [1, 1]} : vector<8x512xf32> to vector<8x128xf32>
      %39 = arith.negf %38 : vector<8x128xf32>
      %40 = math.exp %39 : vector<8x128xf32>
      %cst_23 = arith.constant 1.000000e+00 : f32
      %41 = vector.broadcast %cst_23 : f32 to vector<8x128xf32>
      %42 = arith.addf %41, %40 : vector<8x128xf32>
      %43 = arith.divf %41, %42 : vector<8x128xf32>
      %44 = arith.mulf %35, %17 : vector<8x128xf32>
      %45 = arith.mulf %29, %37 : vector<8x128xf32>
      %46 = arith.addf %44, %45 : vector<8x128xf32>
      %47 = math.tanh %46 : vector<8x128xf32>
      %48 = arith.mulf %43, %47 : vector<8x128xf32>
      %c0_24 = arith.constant 0 : index
      %c0_25 = arith.constant 0 : index
      %c0_26 = arith.constant 0 : index
      %49 = vector.load %arg11[%c0_24, %c0_25, %c0_26] : memref<2x8x128xf32, #tpu.memory_space<vmem>>, vector<1x8x128xf32>
      %50 = vector.shape_cast %49 : vector<1x8x128xf32> to vector<8x128xf32>
      %51 = vector.shape_cast %48 : vector<8x128xf32> to vector<1x8x128xf32>
      tpu.vector_store %arg11[%c0_24, %c0_25, %c0_26], %51 {strides = array<i32>} : memref<2x8x128xf32, #tpu.memory_space<vmem>>, vector<1x8x128xf32>,
      %c0_27 = arith.constant 0 : index
      %c0_28 = arith.constant 0 : index
      %c0_29 = arith.constant 0 : index
      %52 = vector.load %arg12[%c0_27, %c0_28, %c0_29] : memref<2x8x128xf32, #tpu.memory_space<vmem>>, vector<1x8x128xf32>
      %53 = vector.shape_cast %52 : vector<1x8x128xf32> to vector<8x128xf32>
      %54 = vector.shape_cast %46 : vector<8x128xf32> to vector<1x8x128xf32>
      tpu.vector_store %arg12[%c0_27, %c0_28, %c0_29], %54 {strides = array<i32>} : memref<2x8x128xf32, #tpu.memory_space<vmem>>, vector<1x8x128xf32>,
      %c0_30 = arith.constant 0 : index
      %c0_31 = arith.constant 0 : index
      %55 = vector.load %arg6[%c0_30, %c0_31] : memref<256x512xbf16, #tpu.memory_space<vmem>>, vector<256x512xbf16>
      %c0_32 = arith.constant 0 : index
      %c0_33 = arith.constant 0 : index
      %56 = vector.load %arg7[%c0_32, %c0_33] : memref<1x512xf32, #tpu.memory_space<vmem>>, vector<1x512xf32>
      %c1 = arith.constant 1 : index
      %c0_34 = arith.constant 0 : index
      %c0_35 = arith.constant 0 : index
      %57 = vector.load %arg2[%c1, %c0_34, %c0_35] : memref<2x8x128xf32, #tpu.memory_space<vmem>>, vector<1x8x128xf32>
      %58 = vector.shape_cast %57 : vector<1x8x128xf32> to vector<8x128xf32>
      %c1_36 = arith.constant 1 : index
      %c0_37 = arith.constant 0 : index
      %c0_38 = arith.constant 0 : index
      %59 = vector.load %arg3[%c1_36, %c0_37, %c0_38] : memref<2x8x128xf32, #tpu.memory_space<vmem>>, vector<1x8x128xf32>
      %60 = vector.shape_cast %59 : vector<1x8x128xf32> to vector<8x128xf32>
      %61 = arith.truncf %48 : vector<8x128xf32> to vector<8x128xbf16>
      %62 = arith.truncf %58 : vector<8x128xf32> to vector<8x128xbf16>
      %63 = tpu.concatenate %61, %62 in 1 : vector<8x128xbf16>, vector<8x128xbf16> -> vector<8x256xbf16>
      %cst_39 = arith.constant dense<0.000000e+00> : vector<8x512xf32>
      %64 = tpu.matmul %63, %55, %cst_39 {dimension_numbers = #tpu.dot_dimension_numbers<[1], [0], [0], [1], [0, 0, 1, 1], [], []>} : vector<8x256xbf16>, vector<256x512xbf16>, vector<8x512xf32> -> vector<8x512xf32>
      %65 = vector.broadcast %56 : vector<1x512xf32> to vector<8x512xf32>
      %66 = arith.addf %64, %65 : vector<8x512xf32>
      %67 = vector.extract_strided_slice %66 {offsets = [0, 0], sizes = [8, 128], strides = [1, 1]} : vector<8x512xf32> to vector<8x128xf32>
      %68 = arith.negf %67 : vector<8x128xf32>
      %69 = math.exp %68 : vector<8x128xf32>
      %cst_40 = arith.constant 1.000000e+00 : f32
      %70 = vector.broadcast %cst_40 : f32 to vector<8x128xf32>
      %71 = arith.addf %70, %69 : vector<8x128xf32>
      %72 = arith.divf %70, %71 : vector<8x128xf32>
      %73 = vector.extract_strided_slice %66 {offsets = [0, 128], sizes = [8, 128], strides = [1, 1]} : vector<8x512xf32> to vector<8x128xf32>
      %74 = arith.negf %73 : vector<8x128xf32>
      %75 = math.exp %74 : vector<8x128xf32>
      %cst_41 = arith.constant 1.000000e+00 : f32
      %76 = vector.broadcast %cst_41 : f32 to vector<8x128xf32>
      %77 = arith.addf %76, %75 : vector<8x128xf32>
      %78 = arith.divf %76, %77 : vector<8x128xf32>
      %79 = vector.extract_strided_slice %66 {offsets = [0, 256], sizes = [8, 128], strides = [1, 1]} : vector<8x512xf32> to vector<8x128xf32>
      %80 = math.tanh %79 : vector<8x128xf32>
      %81 = vector.extract_strided_slice %66 {offsets = [0, 384], sizes = [8, 128], strides = [1, 1]} : vector<8x512xf32> to vector<8x128xf32>
      %82 = arith.negf %81 : vector<8x128xf32>
      %83 = math.exp %82 : vector<8x128xf32>
      %cst_42 = arith.constant 1.000000e+00 : f32
      %84 = vector.broadcast %cst_42 : f32 to vector<8x128xf32>
      %85 = arith.addf %84, %83 : vector<8x128xf32>
      %86 = arith.divf %84, %85 : vector<8x128xf32>
      %87 = arith.mulf %78, %60 : vector<8x128xf32>
      %88 = arith.mulf %72, %80 : vector<8x128xf32>
      %89 = arith.addf %87, %88 : vector<8x128xf32>
      %90 = math.tanh %89 : vector<8x128xf32>
      %91 = arith.mulf %86, %90 : vector<8x128xf32>
      %c1_43 = arith.constant 1 : index
      %c0_44 = arith.constant 0 : index
      %c0_45 = arith.constant 0 : index
      %92 = vector.load %arg11[%c1_43, %c0_44, %c0_45] : memref<2x8x128xf32, #tpu.memory_space<vmem>>, vector<1x8x128xf32>
      %93 = vector.shape_cast %92 : vector<1x8x128xf32> to vector<8x128xf32>
      %94 = vector.shape_cast %91 : vector<8x128xf32> to vector<1x8x128xf32>
      tpu.vector_store %arg11[%c1_43, %c0_44, %c0_45], %94 {strides = array<i32>} : memref<2x8x128xf32, #tpu.memory_space<vmem>>, vector<1x8x128xf32>,
      %c1_46 = arith.constant 1 : index
      %c0_47 = arith.constant 0 : index
      %c0_48 = arith.constant 0 : index
      %95 = vector.load %arg12[%c1_46, %c0_47, %c0_48] : memref<2x8x128xf32, #tpu.memory_space<vmem>>, vector<1x8x128xf32>
      %96 = vector.shape_cast %95 : vector<1x8x128xf32> to vector<8x128xf32>
      %97 = vector.shape_cast %89 : vector<8x128xf32> to vector<1x8x128xf32>
      tpu.vector_store %arg12[%c1_46, %c0_47, %c0_48], %97 {strides = array<i32>} : memref<2x8x128xf32, #tpu.memory_space<vmem>>, vector<1x8x128xf32>,
      %c0_49 = arith.constant 0 : index
      %c0_50 = arith.constant 0 : index
      %98 = vector.load %arg13[%c0_49, %c0_50] : memref<8x128xf32, #tpu.memory_space<vmem>>, vector<8x128xf32>
      tpu.vector_store %arg13[%c0_49, %c0_50], %91 {strides = array<i32>} : memref<8x128xf32, #tpu.memory_space<vmem>>, vector<8x128xf32>,
    } else {
    }
    %c0 = arith.constant 0 : index
    %c0_1 = arith.constant 0 : index
    %3 = vector.load %arg13[%c0, %c0_1] : memref<8x128xf32, #tpu.memory_space<vmem>>, vector<8x128xf32>
    %4 = arith.truncf %3 : vector<8x128xf32> to vector<8x128xbf16>
    %c0_2 = arith.constant 0 : index
    %c0_3 = arith.constant 0 : index
    %5 = vector.load %arg8[%c0_2, %c0_3] : memref<128x128xbf16, #tpu.memory_space<vmem>>, vector<128x128xbf16>
    %cst = arith.constant dense<0.000000e+00> : vector<8x128xf32>
    %6 = tpu.matmul %4, %5, %cst {dimension_numbers = #tpu.dot_dimension_numbers<[1], [0], [0], [1], [0, 0, 1, 1], [], []>} : vector<8x128xbf16>, vector<128x128xbf16>, vector<8x128xf32> -> vector<8x128xf32>
    %c0_4 = arith.constant 0 : index
    %c0_5 = arith.constant 0 : index
    %7 = vector.load %arg9[%c0_4, %c0_5] : memref<1x128xf32, #tpu.memory_space<vmem>>, vector<1x128xf32>
    %8 = vector.broadcast %7 : vector<1x128xf32> to vector<8x128xf32>
    %9 = arith.addf %6, %8 : vector<8x128xf32>
    %c0_6 = arith.constant 0 : index
    %c0_7 = arith.constant 0 : index
    %10 = vector.load %arg10[%c0_6, %c0_7] : memref<8x128xf32, #tpu.memory_space<vmem>>, vector<8x128xf32>
    tpu.vector_store %arg10[%c0_6, %c0_7], %9 {strides = array<i32>} : memref<8x128xf32, #tpu.memory_space<vmem>>, vector<8x128xf32>,
    return
  }
  func.func @transform_0(%arg0: i32) -> (i32, i32) {
    %c0_i32 = arith.constant 0 : i32
    %c0_i32_0 = arith.constant 0 : i32
    %c0_i32_1 = arith.constant 0 : i32
    return %c0_i32, %c0_i32_0 : i32, i32
  }
  func.func @transform_1(%arg0: i32) -> (i32, i32, i32) {
    %c0_i32 = arith.constant 0 : i32
    %c0_i32_0 = arith.constant 0 : i32
    %c0_i32_1 = arith.constant 0 : i32
    %c0_i32_2 = arith.constant 0 : i32
    return %c0_i32, %c0_i32_0, %c0_i32_1 : i32, i32, i32
  }
  func.func @transform_2(%arg0: i32) -> (i32, i32, i32) {
    %c0_i32 = arith.constant 0 : i32
    %c0_i32_0 = arith.constant 0 : i32
    %c0_i32_1 = arith.constant 0 : i32
    %c0_i32_2 = arith.constant 0 : i32
    return %c0_i32, %c0_i32_0, %c0_i32_1 : i32, i32, i32
  }
  func.func @transform_3(%arg0: i32) -> (i32, i32) {
    %c0_i32 = arith.constant 0 : i32
    %c0_i32_0 = arith.constant 0 : i32
    %c0_i32_1 = arith.constant 0 : i32
    return %c0_i32, %c0_i32_0 : i32, i32
  }
  func.func @transform_4(%arg0: i32) -> (i32, i32) {
    %c0_i32 = arith.constant 0 : i32
    %c0_i32_0 = arith.constant 0 : i32
    %c0_i32_1 = arith.constant 0 : i32
    return %c0_i32, %c0_i32_0 : i32, i32
  }
  func.func @transform_5(%arg0: i32) -> (i32, i32) {
    %c0_i32 = arith.constant 0 : i32
    %c0_i32_0 = arith.constant 0 : i32
    %c0_i32_1 = arith.constant 0 : i32
    return %c0_i32, %c0_i32_0 : i32, i32
  }
  func.func @transform_6(%arg0: i32) -> (i32, i32) {
    %c0_i32 = arith.constant 0 : i32
    %c0_i32_0 = arith.constant 0 : i32
    %c0_i32_1 = arith.constant 0 : i32
    return %c0_i32, %c0_i32_0 : i32, i32
  }
  func.func @transform_7(%arg0: i32) -> (i32, i32) {
    %c0_i32 = arith.constant 0 : i32
    %c0_i32_0 = arith.constant 0 : i32
    return %c0_i32, %arg0 : i32, i32
  }
  func.func @transform_8(%arg0: i32) -> (i32, i32) {
    %c0_i32 = arith.constant 0 : i32
    %c0_i32_0 = arith.constant 0 : i32
    return %c0_i32, %arg0 : i32, i32
  }
  func.func @transform_9(%arg0: i32) -> (i32, i32) {
    %c0_i32 = arith.constant 0 : i32
    %c0_i32_0 = arith.constant 0 : i32
    return %c0_i32, %arg0 : i32, i32
  }
  func.func @transform_10(%arg0: i32) -> (i32, i32, i32) {
    %c0_i32 = arith.constant 0 : i32
    %c0_i32_0 = arith.constant 0 : i32
    %c0_i32_1 = arith.constant 0 : i32
    %c0_i32_2 = arith.constant 0 : i32
    return %c0_i32, %c0_i32_0, %c0_i32_1 : i32, i32, i32
  }
  func.func @transform_11(%arg0: i32) -> (i32, i32, i32) {
    %c0_i32 = arith.constant 0 : i32
    %c0_i32_0 = arith.constant 0 : i32
    %c0_i32_1 = arith.constant 0 : i32
    %c0_i32_2 = arith.constant 0 : i32
    return %c0_i32, %c0_i32_0, %c0_i32_1 : i32, i32, i32
  }
}

</mosaic_0001>

<bundles_post_ra>
// kernel: tpu_custom_call.1
= control target key start
LH: loop header
LB: loop body
LE: loop exit
PB: predicated region body
PF: predicated region fallthrough
CT: control target
= control target key end

     0   :  { %s3572_s0 = inlined_call_operand.hbm [shape: f32[8,128], index: 0, kind: input, shape index: {}]   ;;  %s3573_s1 = inlined_call_operand.hbm [shape: f32[2,8,128], index: 1, kind: input, shape index: {}]   ;;  %s3574_s2 = inlined_call_operand.hbm [shape: f32[2,8,128], index: 2, kind: input, shape index: {}]   ;;  %s3575_s3 = inlined_call_operand.hbm [shape: bf16[256,512], index: 3, kind: input, shape index: {}]   ;;  %s3576_s4 = inlined_call_operand.hbm [shape: f32[1,512], index: 4, kind: input, shape index: {}]   ;;  %s3577_s5 = inlined_call_operand.hbm [shape: bf16[256,512], index: 5, kind: input, shape index: {}]   ;;  %s3578_s6 = inlined_call_operand.vmem [shape: f32[1,512], index: 6, kind: input, shape index: {}]   ;;  %s3579_s7 = inlined_call_operand.hbm [shape: bf16[128,384], index: 7, kind: input, shape index: {}]   ;;  %s3580_s8 = inlined_call_operand.vmem [shape: f32[1,384], index: 8, kind: input, shape index: {}]   ;;  %s3581_s9 = inlined_call_operand.hbm [shape: f32[8,384], index: 9, kind: output, shape index: {0}]   ;;  %s3582_s10 = inlined_call_operand.hbm [shape: f32[2,8,128], index: 10, kind: output, shape index: {1}]   ;;  %s3583_s11 = inlined_call_operand.hbm [shape: f32[2,8,128], index: 11, kind: output, shape index: {2}]  }
   0x1   :  { %3586 = sst [smem:[#allocation26_spill]] %s3572_s0 }
   0x2   :  { %3587 = sst [smem:[#allocation27_spill]] %s3573_s1 }
   0x3   :  { %3588 = sst [smem:[#allocation28_spill]] %s3574_s2 }
   0x4   :  { %3589 = sst [smem:[#allocation29_spill]] %s3575_s3 }
   0x5   :  { %3590 = sst [smem:[#allocation30_spill]] %s3576_s4 }
   0x6   :  { %3591 = sst [smem:[#allocation31_spill]] %s3577_s5 }
   0x7   :  { %3592 = sst [smem:[#allocation32_spill]] %s3578_s6 }
   0x8   :  { %3593 = sst [smem:[#allocation33_spill]] %s3581_s9 }
   0x9   :  { %17 = vsyncpa [#allocation4], 0 }
   0xa   :  { %18 = vsyncpa [#allocation7], 0 }
   0xb   :  { %19 = vsyncpa [#allocation10], 0 }
   0xc   :  { %20 = vsyncpa [#allocation13], 0 }
   0xd   :  { %21 = vsyncpa [#allocation5], 0 }
   0xe   :  { %23 = vsyncpa [#allocation5 + $0x1], 0 }
   0xf   :  { %24 = vsyncpa [#allocation17], 0  ;;  %s3249_s17 = smov 0   ;;  %s3251_s18 = smov 0  }
  0x10   :  { %s3253_s19 = smov 0   ;;  %s3255_s20 = smov 0  }
  0x11 LB: > { %s3594_s0 = sld [smem:[#allocation26_spill]]  ;;  %s3273_s24 = sadd.s32 4294967295, %s3170_s20   ;;  %s3170_s20 = sphi %s3255_s20, %s3626_s20   ;;  %s3166_s19 = sphi %s3253_s19, %s3625_s19   ;;  %s3162_s18 = sphi %s3251_s18, %s3624_s18   ;;  %s3158_s17 = sphi %s3249_s17, %s3623_s17  }
  0x12   : > { %p1941_p0 = scmp.ge.s32.totalorder %s3170_s20, 1  ;;  %p198_p1 = scmp.eq.s32.totalorder %s3273_s24, 0 }
  0x13   : > { %p302_p2 = scmp.lt.s32.totalorder %s3170_s20, 4  ;;  %s3172_s26 = smov [#allocation3]  }
  0x14   : > { %s316_s27 = sshll.u32 %s3172_s26, 4  ;;  %s3596_s1 = sld [smem:[#allocation27_spill]]  ;;  %s317_s27 = int_to_ptr.vmem [resolvable:$true] %s316_s27 }
  0x15   : > { %p3279_p4 = pnand %p1941_p0, %p302_p2  ;;  %s3173_s13 = smov [#allocation6]  }
  0x16   : > { %s327_s14 = sshll.u32 %s3173_s13, 4  ;;  %s3174_s15 = smov 128   ;;  %s328_s14 = int_to_ptr.vmem [resolvable:$true] %s327_s14 }
  0x17   : > { %s314_s23 = sshll.u32 %s3594_s0, 4  ;;  %p2691_p5 = pneg %p3279_p4  ;;  %s315_s23 = int_to_ptr.hbm [resolvable:$true] %s314_s23 }
  0x18   : > { %s3175_s16 = smov 8   ;;  %s3598_s3 = sld [smem:[#allocation29_spill]] }
  0x19   : > { %p3290_p6 = pnand %p2691_p5, %p198_p1  ;;  %s3176_s28 = smov [#allocation9]  }
  0x1a   : > { %s325_s30 = sshll.u32 %s3596_s1, 4  ;;  %s355_s29 = sshll.u32 %s3176_s28, 4  ;;  %s326_s30 = int_to_ptr.hbm [resolvable:$true] %s325_s30  ;;  %s356_s29 = int_to_ptr.vmem [resolvable:$true] %s355_s29 }
  0x1b   : > { %2694 = dma.hbm_to_vmem [thread:$0]  (!%p3290_p6), %s315_s23, 128, %s317_s27, [#allocation4]  }
  0x1c   : > { %2697 = dma.hbm_to_vmem [thread:$0]  (!%p3290_p6), %s326_s30, 256, %s328_s14, [#allocation7], %s3174_s15, %s3174_s15, %s3175_s16  }
  0x1d   : > { %s3599_s2 = sld [smem:[#allocation28_spill]]  ;;  %s3177_s9 = smov 256  }
  0x1e   : > { %s353_s26 = sshll.u32 %s3598_s3, 4  ;;  %s3178_s23 = smov 16   ;;  %s354_s26 = int_to_ptr.hbm [resolvable:$true] %s353_s26 }
  0x1f   : > { %2703 = dma.hbm_to_vmem [thread:$0]  (!%p3290_p6), %s354_s26, 8192, %s356_s29, [#allocation10], %s3177_s9, %s3177_s9, %s3178_s23  }
  0x20   : > { %s3179_s27 = smov [#allocation8]   ;;  %s3600_s4 = sld [smem:[#allocation30_spill]] }
  0x21   : > { %s341_s30 = sshll.u32 %s3179_s27, 4  ;;  %s3601_s5 = sld [smem:[#allocation31_spill]]  ;;  %s342_s30 = int_to_ptr.vmem [resolvable:$true] %s341_s30 }
  0x22   : > { %s3180_s28 = smov [#allocation11]   ;;  %s3181_s27 = smov [#allocation12]  }
  0x23   : > { %s339_s13 = sshll.u32 %s3599_s2, 4  ;;  %s370_s29 = sshll.u32 %s3180_s28, 4  ;;  %s340_s13 = int_to_ptr.hbm [resolvable:$true] %s339_s13  ;;  %s371_s29 = int_to_ptr.vmem [resolvable:$true] %s370_s29 }
  0x24   : > { %2700 = dma.hbm_to_vmem [thread:$0]  (!%p3290_p6), %s340_s13, 256, %s342_s30, [#allocation7], %s3174_s15, %s3174_s15, %s3175_s16  }
  0x25   : > { %s381_s15 = sshll.u32 %s3181_s27, 4  ;;  %s1940_s16 = sadd.s32 4294967294, %s3170_s20   ;;  %s382_s15 = int_to_ptr.vmem [resolvable:$true] %s381_s15 }
  0x26   : > { %s368_s22 = sshll.u32 %s3600_s4, 4  ;;  %s3320_s13 = sadd.s32 1, %s3170_s20   ;;  %s369_s22 = int_to_ptr.hbm [resolvable:$true] %s368_s22 }
  0x27   : > { %s379_s26 = sshll.u32 %s3601_s5, 4  ;;  %s181_s30 = ssub.s32 %s3170_s20, %s3320_s13  ;;  %s380_s26 = int_to_ptr.hbm [resolvable:$true] %s379_s26 }
  0x28   : > { %2706 = dma.hbm_to_vmem [thread:$0]  (!%p3290_p6), %s369_s22, 64, %s371_s29, [#allocation10]  }
  0x29   : > { %2709 = dma.hbm_to_vmem [thread:$0]  (!%p3290_p6), %s380_s26, 8192, %s382_s15, [#allocation13], %s3177_s9, %s3177_s9, %s3178_s23  }
  0x2a   : > { %s184_s14 = sadd.s32 1, %s3166_s19  ;;  %p182_p7 = scmp.eq.s32.totalorder %s181_s30, 0 }
  0x2b   : > { %p191_p8 = scmp.ne.s32.totalorder %s3166_s19, %s3162_s18  ;;  %p192_p9 = scmp.eq.s32.totalorder %s3170_s20, 0 }
  0x2c   : > { %p197_p10 = scmp.ne.s32.totalorder %s3162_s18, %s3158_s17  ;;  %p3585_p13 = scmp.eq.s32.totalorder %s3273_s24, 2 }
  0x2d   : > { %s3331_s21 = scalar_select %p182_p7, %s3166_s19, %s184_s14  }
  0x2e   : > { %p3333_p11 = por %p192_p9, %p191_p8  ;;  %p3339_p12 = por %p198_p1, %p197_p10 }
  0x2f   : > { %p253_p0 = scmp.eq.s32.totalorder %s1940_s16, 2  ;;  %p2724_p2 = scmp.lt.s32.totalorder %s3170_s20, 3 }
  0x30   : > { %s398_s12 = sand.u32 1, %s3170_s20   ;;  %p3348_p5 = por %p3585_p13, %p191_p8 }
  0x31   : > { %p3352_p6 = por %p253_p0, %p197_p10  ;;  %s400_s1 = sand.u32 1, %s3166_s19  }
  0x32   : > { %s1949_s26 = sshll.u32 %s400_s1, 6  ;;  %s1950_s28 = sshll.u32 %s3170_s20, 2 }
  0x33   : > { %s406_s15 = scalar_lea.hbm %s3579_s7, %s1950_s28  ;;  %s402_s16 = scalar_lea.vmem [#allocation14], %s1949_s26 }
  0x34   : > { %s407_s30 = sshll.u32 %s406_s15, 4  ;;  %s409_s14 = sshll.u32 %s402_s16, 4  ;;  %s408_s30 = int_to_ptr.hbm [resolvable:$true] %s407_s30  ;;  %s410_s14 = int_to_ptr.vmem [resolvable:$true] %s409_s14 }
  0x35   : > { %p3365_p7 = pnand %p2724_p2, %p3333_p11  ;;  %s399_s3 = scalar_lea.sflag [#allocation4], %s398_s12 }
  0x36   : > { %s2998_s4 = sshra.s32 %s408_s30, 4  ;;  %s3005_s29 = scalar_lea.hbm %s3579_s7, 192  ;;  %s2999_s4 = int_to_ptr.hbm [resolvable:$true] %s2998_s4 }
  0x37   : > { %s3000_s1 = scalar_lea.hbm %s2999_s4, 64  ;;  %p3002_p9 = pneg %p3365_p7 }
  0x38   : > { %p3001_p8 = scmp.ne.s32.totalorder %s2999_s4, %s3000_s1  ;;  %p3006_p11 = scmp.lt.s32.totalorder %s2999_s4, %s3579_s7 }
  0x39   : > { %p3007_p2 = scmp.lt.s32.totalorder %s3005_s29, %s3000_s1 }
  0x3a   : > { %p3003_p10 = pnand %p3002_p9, %p3001_p8 }
  0x3b   : > { %p3008_p13 = por %p3007_p2, %p3006_p11 }
  0x3c   : > { %p3004_p0 = pneg %p3003_p10 }
  0x3e   : > { %p3009_p3 = pnand %p3008_p13, %p3004_p0 }
  0x40   : > { %3012 = shalt.err (!%p3009_p3)
}
  0x41   : > { %s3182_s12 = smov 192   ;;  %s3183_s15 = smov 64  }
  0x42   : > { %s3184_s16 = smov 4   ;;  %427 = sbr.rel (%p3279_p4) target bundleno = 678 (0x2a6), region = 56 }
  0x43   : > { %2713 = dma.hbm_to_vmem [thread:$0]  (!%p3365_p7), %s408_s30, 1024, %s410_s14, %s399_s3, %s3182_s12, %s3183_s15, %s3184_s16  }
  0x47   : > { %3129 = dma.done.wait (%p198_p1), [#allocation4], 128  }
  0x48   : > { %3131 = vsyncadd (%p198_p1), [#allocation4], 4294967168 }
  0x49   : > { %3133 = dma.done.wait (%p198_p1), [#allocation7], 512  }
  0x4a   : > { %3135 = vsyncadd (%p198_p1), [#allocation7], 4294966784 }
  0x4b   : > { %3137 = dma.done.wait (%p198_p1), [#allocation10], 8256  }
  0x4c   : > { %3139 = vsyncadd (%p198_p1), [#allocation10], 4294959040 }
  0x4d   : > { %3141 = dma.done.wait (%p198_p1), [#allocation13], 8192  }
  0x4e   : > { %3143 = vsyncadd (%p198_p1), [#allocation13], 4294959104  ;;  %s459_s2 = sand.u32 1, %s3273_s24   ;;  %s3399_s3 = sand.u32 1, %s3162_s18  }
  0x4f   : > { %s1958_s4 = sshll.u32 %s3399_s3, 6  ;;  %s460_s25 = scalar_lea.sflag [#allocation4], %s459_s2 }
  0x50   : > { %s3402_s30 = scalar_lea.vmem [#allocation14], %s1958_s4 }
  0x51   : > { %3145 = dma.done.wait (%p3339_p12), %s460_s25, 1024  }
  0x52   : > { %3147 = vsyncadd (%p3339_p12), %s460_s25, 4294966272  ;;  %s1959_s14 = sshll.u32 %s3399_s3, 3  ;;  %p506_p1 = scmp.lt.s32.totalorder %s3273_s24, 2 }
  0x53   : > { %s3417_s22 = scalar_lea.vmem [#allocation15], %s1959_s14  ;;  %p3607_p3 = scmp.ne.s32.totalorder %s3273_s24, 0 }
  0x54   : > { %s3411_s1 = scalar_select %p506_p1, %s3273_s24, 2 }
  0x55   : > { %512 = sbr.rel (%p3607_p3) target bundleno = 509 (0x1fd), region = 88  ;;  %s3616_s6 = sld [smem:[#allocation32_spill]] (!%p3607_p3) }
  0x5a   : > { %v2075_v0 = vld [vmem:[#allocation9 + $0xe0] sm:$0xf]  ;;  %v2549_v1 = vld [vmem:[#allocation9 + $0xec] sm:$0xf0]  ;;  %v2547_v2 = vld [vmem:[#allocation9 + $0xe4] sm:$0xf] }
  0x5b   : > { %v2076_v3 = vor.u32 %v2549_v1, %v2075_v0  ;;  %v2077_v4 = vld [vmem:[#allocation9 + $0xf0] sm:$0xf0]  ;;  %v2579_v5 = vld [vmem:[#allocation9 + $0x1e4] sm:$0xf]  ;;  %v2203_v9 = vld [vmem:[#allocation9 + $0x1e0] sm:$0xf] }
  0x5c   : > { %v2205_v6 = vld [vmem:[#allocation9 + $0x1f0] sm:$0xf0]  ;;  %v2080_v7 = vor.u32 %v2547_v2, %v2077_v4  ;;  %v2581_v10 = vld [vmem:[#allocation9 + $0x1ec] sm:$0xf0]  ;;  %v2059_v11 = vld [vmem:[#allocation9 + $0xc0] sm:$0xf] }
  0x5d   : > { %v2208_v8 = vor.u32 %v2579_v5, %v2205_v6  ;;  %912 = vmatpush.bf16.msra.mxu0 %v2076_v3  ;;  %v2204_v12 = vor.u32 %v2581_v10, %v2203_v9  ;;  %v2545_v13 = vld [vmem:[#allocation9 + $0xcc] sm:$0xf0]  ;;  %v2543_v14 = vld [vmem:[#allocation9 + $0xc4] sm:$0xf]  ;;  %v2061_v15 = vld [vmem:[#allocation9 + $0xd0] sm:$0xf0] }
  0x5e   : > { %938 = vmatpush.bf16.msra.mxu2 %v2080_v7  ;;  %v2060_v16 = vor.u32 %v2545_v13, %v2059_v11  ;;  %v2064_v17 = vor.u32 %v2543_v14, %v2061_v15  ;;  %v2575_v18 = vld [vmem:[#allocation9 + $0x1c4] sm:$0xf]  ;;  %v2189_v19 = vld [vmem:[#allocation9 + $0x1d0] sm:$0xf0]  ;;  %v2187_v20 = vld [vmem:[#allocation9 + $0x1c0] sm:$0xf] }
  0x5f   : > { %951 = vmatpush.bf16.msra.mxu3 %v2208_v8  ;;  %925 = vmatpush.bf16.msra.mxu1 %v2204_v12  ;;  %v2192_v21 = vor.u32 %v2575_v18, %v2189_v19  ;;  %v2577_v22 = vld [vmem:[#allocation9 + $0x1cc] sm:$0xf0]  ;;  %v2043_v23 = vld [vmem:[#allocation9 + $0xa0] sm:$0xf]  ;;  %v2539_v26 = vld [vmem:[#allocation9 + $0xa4] sm:$0xf] }
  0x60   : > { %v2541_v24 = vld [vmem:[#allocation9 + $0xac] sm:$0xf0]  ;;  %v2188_v25 = vor.u32 %v2577_v22, %v2187_v20  ;;  %v2045_v27 = vld [vmem:[#allocation9 + $0xb0] sm:$0xf0]  ;;  %v2571_v28 = vld [vmem:[#allocation9 + $0x1a4] sm:$0xf] }
  0x61   : > { %913 = vmatpush.bf16.msra.mxu0 %v2060_v16  ;;  %v2044_v29 = vor.u32 %v2541_v24, %v2043_v23  ;;  %v2173_v30 = vld [vmem:[#allocation9 + $0x1b0] sm:$0xf0]  ;;  %v2171_v31 = vld [vmem:[#allocation9 + $0x1a0] sm:$0xf]  ;;  %v2573_v32 = vld [vmem:[#allocation9 + $0x1ac] sm:$0xf0]  ;;  %v2048_v33 = vor.u32 %v2539_v26, %v2045_v27 }
  0x62   : > { %939 = vmatpush.bf16.msra.mxu2 %v2064_v17  ;;  %v2176_v34 = vor.u32 %v2571_v28, %v2173_v30  ;;  %v2027_v35 = vld [vmem:[#allocation9 + $0x80] sm:$0xf]  ;;  %v2537_v36 = vld [vmem:[#allocation9 + $0x8c] sm:$0xf0]  ;;  %v2535_v37 = vld [vmem:[#allocation9 + $0x84] sm:$0xf]  ;;  %v2172_v38 = vor.u32 %v2573_v32, %v2171_v31 }
  0x63   : > { %952 = vmatpush.bf16.msra.mxu3 %v2192_v21  ;;  %926 = vmatpush.bf16.msra.mxu1 %v2188_v25  ;;  %v2029_v39 = vld [vmem:[#allocation9 + $0x90] sm:$0xf0]  ;;  %v2567_v40 = vld [vmem:[#allocation9 + $0x184] sm:$0xf]  ;;  %v2155_v42 = vld [vmem:[#allocation9 + $0x180] sm:$0xf]  ;;  %v2028_v44 = vor.u32 %v2537_v36, %v2027_v35 }
  0x64   : > { %v2157_v41 = vld [vmem:[#allocation9 + $0x190] sm:$0xf0]  ;;  %v2569_v43 = vld [vmem:[#allocation9 + $0x18c] sm:$0xf0]  ;;  %v2032_v45 = vor.u32 %v2535_v37, %v2029_v39  ;;  %v2011_v47 = vld [vmem:[#allocation9 + $0x60] sm:$0xf] }
  0x65   : > { %914 = vmatpush.bf16.msra.mxu0 %v2044_v29  ;;  %v2160_v46 = vor.u32 %v2567_v40, %v2157_v41  ;;  %v2533_v48 = vld [vmem:[#allocation9 + $0x6c] sm:$0xf0]  ;;  %v2531_v49 = vld [vmem:[#allocation9 + $0x64] sm:$0xf]  ;;  %v2156_v50 = vor.u32 %v2569_v43, %v2155_v42  ;;  %v2013_v51 = vld [vmem:[#allocation9 + $0x70] sm:$0xf0] }
  0x66   : > { %940 = vmatpush.bf16.msra.mxu2 %v2048_v33  ;;  %v2563_v52 = vld [vmem:[#allocation9 + $0x164] sm:$0xf]  ;;  %v2141_v53 = vld [vmem:[#allocation9 + $0x170] sm:$0xf0]  ;;  %v2139_v54 = vld [vmem:[#allocation9 + $0x160] sm:$0xf]  ;;  %v2012_v56 = vor.u32 %v2533_v48, %v2011_v47  ;;  %v2016_v57 = vor.u32 %v2531_v49, %v2013_v51 }
  0x67   : > { %953 = vmatpush.bf16.msra.mxu3 %v2176_v34  ;;  %927 = vmatpush.bf16.msra.mxu1 %v2172_v38  ;;  %v2565_v55 = vld [vmem:[#allocation9 + $0x16c] sm:$0xf0]  ;;  %v2144_v58 = vor.u32 %v2563_v52, %v2141_v53  ;;  %v1995_v59 = vld [vmem:[#allocation9 + $0x40] sm:$0xf]  ;;  %v2527_v61 = vld [vmem:[#allocation9 + $0x44] sm:$0xf] }
  0x68   : > { %v2529_v60 = vld [vmem:[#allocation9 + $0x4c] sm:$0xf0]  ;;  %v2140_v62 = vor.u32 %v2565_v55, %v2139_v54  ;;  %v1997_v63 = vld [vmem:[#allocation9 + $0x50] sm:$0xf0]  ;;  %v2559_v0 = vld [vmem:[#allocation9 + $0x144] sm:$0xf] }
  0x69   : > { %915 = vmatpush.bf16.msra.mxu0 %v2028_v44  ;;  %v2125_v1 = vld [vmem:[#allocation9 + $0x150] sm:$0xf0]  ;;  %v2123_v2 = vld [vmem:[#allocation9 + $0x140] sm:$0xf]  ;;  %v2561_v3 = vld [vmem:[#allocation9 + $0x14c] sm:$0xf0]  ;;  %v1996_v4 = vor.u32 %v2529_v60, %v1995_v59  ;;  %v2000_v5 = vor.u32 %v2527_v61, %v1997_v63 }
  0x6a   : > { %941 = vmatpush.bf16.msra.mxu2 %v2032_v45  ;;  %v2128_v6 = vor.u32 %v2559_v0, %v2125_v1  ;;  %v1979_v7 = vld [vmem:[#allocation9 + $0x20] sm:$0xf]  ;;  %v2525_v8 = vld [vmem:[#allocation9 + $0x2c] sm:$0xf0]  ;;  %v2523_v9 = vld [vmem:[#allocation9 + $0x24] sm:$0xf]  ;;  %v2124_v10 = vor.u32 %v2561_v3, %v2123_v2 }
  0x6b   : > { %954 = vmatpush.bf16.msra.mxu3 %v2160_v46  ;;  %928 = vmatpush.bf16.msra.mxu1 %v2156_v50  ;;  %v1981_v11 = vld [vmem:[#allocation9 + $0x30] sm:$0xf0]  ;;  %v2555_v12 = vld [vmem:[#allocation9 + $0x124] sm:$0xf]  ;;  %v2107_v14 = vld [vmem:[#allocation9 + $0x120] sm:$0xf]  ;;  %v1980_v16 = vor.u32 %v2525_v8, %v1979_v7 }
  0x6c   : > { %v2109_v13 = vld [vmem:[#allocation9 + $0x130] sm:$0xf0]  ;;  %v2557_v15 = vld [vmem:[#allocation9 + $0x12c] sm:$0xf0]  ;;  %v1963_v17 = vld [vmem:[#allocation9] sm:$0xf]  ;;  %v1984_v19 = vor.u32 %v2523_v9, %v1981_v11 }
  0x6d   : > { %916 = vmatpush.bf16.msra.mxu0 %v2012_v56  ;;  %v2521_v18 = vld [vmem:[#allocation9 + $0xc] sm:$0xf0]  ;;  %v2112_v20 = vor.u32 %v2555_v12, %v2109_v13  ;;  %v2519_v21 = vld [vmem:[#allocation9 + $0x4] sm:$0xf]  ;;  %v1965_v22 = vld [vmem:[#allocation9 + $0x10] sm:$0xf0]  ;;  %v2108_v24 = vor.u32 %v2557_v15, %v2107_v14 }
  0x6e   : > { %942 = vmatpush.bf16.msra.mxu2 %v2016_v57  ;;  %v2551_v23 = vld [vmem:[#allocation9 + $0x104] sm:$0xf]  ;;  %v2093_v25 = vld [vmem:[#allocation9 + $0x110] sm:$0xf0]  ;;  %v2083_v26 = vld [vmem:[#allocation9 + $0xe8] sm:$0xf]  ;;  %v1964_v31 = vor.u32 %v2521_v18, %v1963_v17  ;;  %v1968_v35 = vor.u32 %v2519_v21, %v1965_v22 }
  0x6f   : > { %955 = vmatpush.bf16.msra.mxu3 %v2144_v58  ;;  %929 = vmatpush.bf16.msra.mxu1 %v2140_v62  ;;  %v2550_v27 = vld [vmem:[#allocation9 + $0xf4] sm:$0xf0]  ;;  %v2548_v28 = vld [vmem:[#allocation9 + $0xec] sm:$0xf]  ;;  %v2085_v29 = vld [vmem:[#allocation9 + $0xf8] sm:$0xf0]  ;;  %v2096_v36 = vor.u32 %v2551_v23, %v2093_v25 }
  0x70   : > { %v2580_v30 = vld [vmem:[#allocation9 + $0x1ec] sm:$0xf]  ;;  %v2213_v32 = vld [vmem:[#allocation9 + $0x1f8] sm:$0xf0]  ;;  %v2091_v33 = vld [vmem:[#allocation9 + $0x100] sm:$0xf]  ;;  %v2084_v40 = vor.u32 %v2550_v27, %v2083_v26  ;;  %v2088_v41 = vor.u32 %v2548_v28, %v2085_v29 }
  0x71   : > { %917 = vmatpush.bf16.msra.mxu0 %v1996_v4  ;;  %v2553_v34 = vld [vmem:[#allocation9 + $0x10c] sm:$0xf0]  ;;  %v513_v37 = vld [vmem:[#allocation3] sm:$0xff]  ;;  %v2211_v38 = vld [vmem:[#allocation9 + $0x1e8] sm:$0xf]  ;;  %v2216_v44 = vor.u32 %v2580_v30, %v2213_v32 }
  0x72   : > { %943 = vmatpush.bf16.msra.mxu2 %v2000_v5  ;;  %v2582_v39 = vld [vmem:[#allocation9 + $0x1f4] sm:$0xf0]  ;;  %v579_v42 = vld [vmem:[#allocation6] sm:$0xff]  ;;  %v2067_v43 = vld [vmem:[#allocation9 + $0xc8] sm:$0xf]  ;;  %v2092_v45 = vor.u32 %v2553_v34, %v2091_v33  ;;  %v3421_v49 = vpack.c.bf16 %v513_v37, %v513_v37 }
  0x73   : > { %956 = vmatpush.bf16.msra.mxu3 %v2128_v6  ;;  %930 = vmatpush.bf16.msra.mxu1 %v2124_v10  ;;  %v2546_v46 = vld [vmem:[#allocation9 + $0xd4] sm:$0xf0]  ;;  %v2544_v47 = vld [vmem:[#allocation9 + $0xcc] sm:$0xf]  ;;  %v2069_v48 = vld [vmem:[#allocation9 + $0xd8] sm:$0xf0]  ;;  %v2212_v50 = vor.u32 %v2582_v39, %v2211_v38  ;;  %v3423_v53 = vpack.c.bf16 %v579_v42, %v579_v42 }
  0x74   : > { %v2576_v51 = vld [vmem:[#allocation9 + $0x1cc] sm:$0xf]  ;;  %v2197_v52 = vld [vmem:[#allocation9 + $0x1d8] sm:$0xf0]  ;;  %v2195_v54 = vld [vmem:[#allocation9 + $0x1c8] sm:$0xf]  ;;  %v2068_v56 = vor.u32 %v2546_v46, %v2067_v43  ;;  %v2072_v57 = vor.u32 %v2544_v47, %v2069_v48 }
  0x75   : > { %918 = vmatpush.bf16.msra.mxu0 %v1980_v16  ;;  %v2578_v55 = vld [vmem:[#allocation9 + $0x1d4] sm:$0xf0]  ;;  %v2051_v58 = vld [vmem:[#allocation9 + $0xa8] sm:$0xf]  ;;  %v2200_v59 = vor.u32 %v2576_v51, %v2197_v52  ;;  %v2540_v61 = vld [vmem:[#allocation9 + $0xac] sm:$0xf] }
  0x76   : > { %944 = vmatpush.bf16.msra.mxu2 %v1984_v19  ;;  %v2542_v60 = vld [vmem:[#allocation9 + $0xb4] sm:$0xf0]  ;;  %v2053_v62 = vld [vmem:[#allocation9 + $0xb8] sm:$0xf0]  ;;  %v2196_v63 = vor.u32 %v2578_v55, %v2195_v54  ;;  %v2572_v0 = vld [vmem:[#allocation9 + $0x1ac] sm:$0xf] }
  0x77   : > { %957 = vmatpush.bf16.msra.mxu3 %v2112_v20  ;;  %931 = vmatpush.bf16.msra.mxu1 %v2108_v24  ;;  %v2181_v1 = vld [vmem:[#allocation9 + $0x1b8] sm:$0xf0]  ;;  %v2179_v2 = vld [vmem:[#allocation9 + $0x1a8] sm:$0xf]  ;;  %v2574_v3 = vld [vmem:[#allocation9 + $0x1b4] sm:$0xf0]  ;;  %v2052_v4 = vor.u32 %v2542_v60, %v2051_v58  ;;  %v2056_v5 = vor.u32 %v2540_v61, %v2053_v62 }
  0x78   : > { %v2035_v6 = vld [vmem:[#allocation9 + $0x88] sm:$0xf]  ;;  %v2184_v7 = vor.u32 %v2572_v0, %v2181_v1  ;;  %v2538_v8 = vld [vmem:[#allocation9 + $0x94] sm:$0xf0]  ;;  %v2536_v9 = vld [vmem:[#allocation9 + $0x8c] sm:$0xf]  ;;  %v2180_v11 = vor.u32 %v2574_v3, %v2179_v2 }
  0x79   : > { %919 = vmatpush.bf16.msra.mxu0 %v1964_v31  ;;  %v2037_v10 = vld [vmem:[#allocation9 + $0x98] sm:$0xf0]  ;;  %v2568_v12 = vld [vmem:[#allocation9 + $0x18c] sm:$0xf]  ;;  %v2163_v14 = vld [vmem:[#allocation9 + $0x188] sm:$0xf]  ;;  %v2036_v16 = vor.u32 %v2538_v8, %v2035_v6 }
  0x7a   : > { %945 = vmatpush.bf16.msra.mxu2 %v1968_v35  ;;  %v2165_v13 = vld [vmem:[#allocation9 + $0x198] sm:$0xf0]  ;;  %v2570_v15 = vld [vmem:[#allocation9 + $0x194] sm:$0xf0]  ;;  %v2040_v17 = vor.u32 %v2536_v9, %v2037_v10  ;;  %v2019_v18 = vld [vmem:[#allocation9 + $0x68] sm:$0xf] }
  0x7b   : > { %958 = vmatpush.bf16.msra.mxu3 %v2096_v36  ;;  %932 = vmatpush.bf16.msra.mxu1 %v2092_v45  ;;  %v2168_v19 = vor.u32 %v2568_v12, %v2165_v13  ;;  %v2534_v20 = vld [vmem:[#allocation9 + $0x74] sm:$0xf0]  ;;  %v2532_v21 = vld [vmem:[#allocation9 + $0x6c] sm:$0xf]  ;;  %v2021_v22 = vld [vmem:[#allocation9 + $0x78] sm:$0xf0]  ;;  %v2164_v23 = vor.u32 %v2570_v15, %v2163_v14 }
  0x7c   : > { %920 = vmatmul.bf16.vlgmr.msra.gmra.mxu0 %v3421_v49  ;;  %v2564_v24 = vld [vmem:[#allocation9 + $0x16c] sm:$0xf]  ;;  %v2149_v25 = vld [vmem:[#allocation9 + $0x178] sm:$0xf0]  ;;  %v2147_v26 = vld [vmem:[#allocation9 + $0x168] sm:$0xf]  ;;  %v2020_v28 = vor.u32 %v2534_v20, %v2019_v18  ;;  %v2024_v29 = vor.u32 %v2532_v21, %v2021_v22 }
  0x7d   : > { %964 = vmatpush.bf16.msrb.mxu0 %v2084_v40  ;;  %946 = vmatmul.bf16.vlgmr.msra.gmra.mxu2 %v3421_v49  ;;  %v2566_v27 = vld [vmem:[#allocation9 + $0x174] sm:$0xf0]  ;;  %v2003_v30 = vld [vmem:[#allocation9 + $0x48] sm:$0xf]  ;;  %v2152_v31 = vor.u32 %v2564_v24, %v2149_v25  ;;  %v2528_v33 = vld [vmem:[#allocation9 + $0x4c] sm:$0xf] }
  0x7e   : > { %990 = vmatpush.bf16.msrb.mxu2 %v2088_v41  ;;  %959 = vmatmul.bf16.vlgmr.msra.gmra.mxu3 %v3423_v53  ;;  %v2530_v32 = vld [vmem:[#allocation9 + $0x54] sm:$0xf0]  ;;  %v2005_v34 = vld [vmem:[#allocation9 + $0x58] sm:$0xf0]  ;;  %v2148_v35 = vor.u32 %v2566_v27, %v2147_v26  ;;  %v2560_v36 = vld [vmem:[#allocation9 + $0x14c] sm:$0xf] }
  0x7f   : > { %1003 = vmatpush.bf16.msrb.mxu3 %v2216_v44  ;;  %977 = vmatpush.bf16.msrb.mxu1 %v2212_v50  ;;  %v2133_v37 = vld [vmem:[#allocation9 + $0x158] sm:$0xf0]  ;;  %v2131_v38 = vld [vmem:[#allocation9 + $0x148] sm:$0xf]  ;;  %v2562_v39 = vld [vmem:[#allocation9 + $0x154] sm:$0xf0]  ;;  %v2004_v40 = vor.u32 %v2530_v32, %v2003_v30  ;;  %v2008_v41 = vor.u32 %v2528_v33, %v2005_v34 }
  0x80   : > { %933 = vmatmul.bf16.vlgmr.msra.gmra.mxu1 %v3423_v53  ;;  %v1987_v42 = vld [vmem:[#allocation9 + $0x28] sm:$0xf]  ;;  %v2136_v43 = vor.u32 %v2560_v36, %v2133_v37  ;;  %v2526_v44 = vld [vmem:[#allocation9 + $0x34] sm:$0xf0]  ;;  %v2524_v45 = vld [vmem:[#allocation9 + $0x2c] sm:$0xf]  ;;  %v2132_v47 = vor.u32 %v2562_v39, %v2131_v38 }
  0x81   : > { %965 = vmatpush.bf16.msrb.mxu0 %v2068_v56  ;;  %v1989_v46 = vld [vmem:[#allocation9 + $0x38] sm:$0xf0]  ;;  %v2556_v48 = vld [vmem:[#allocation9 + $0x12c] sm:$0xf]  ;;  %v2115_v51 = vld [vmem:[#allocation9 + $0x128] sm:$0xf]  ;;  %v1988_v54 = vor.u32 %v2526_v44, %v1987_v42 }
  0x82   : > { %991 = vmatpush.bf16.msrb.mxu2 %v2072_v57  ;;  %v2117_v50 = vld [vmem:[#allocation9 + $0x138] sm:$0xf0]  ;;  %v2558_v52 = vld [vmem:[#allocation9 + $0x134] sm:$0xf0]  ;;  %v1992_v55 = vor.u32 %v2524_v45, %v1989_v46  ;;  %v1971_v56 = vld [vmem:[#allocation9 + $0x8] sm:$0xf] }
  0x83   : > { %1004 = vmatpush.bf16.msrb.mxu3 %v2200_v59  ;;  %978 = vmatpush.bf16.msrb.mxu1 %v2196_v63  ;;  %v2120_v57 = vor.u32 %v2556_v48, %v2117_v50  ;;  %v2522_v58 = vld [vmem:[#allocation9 + $0x14] sm:$0xf0]  ;;  %v2520_v59 = vld [vmem:[#allocation9 + $0xc] sm:$0xf]  ;;  %v1973_v60 = vld [vmem:[#allocation9 + $0x18] sm:$0xf0]  ;;  %v2116_v61 = vor.u32 %v2558_v52, %v2115_v51 }
  0x84   : > { %v2552_v62 = vld [vmem:[#allocation9 + $0x10c] sm:$0xf]  ;;  %v2101_v63 = vld [vmem:[#allocation9 + $0x118] sm:$0xf0]  ;;  %v2099_v0 = vld [vmem:[#allocation9 + $0x108] sm:$0xf]  ;;  %v1972_v2 = vor.u32 %v2522_v58, %v1971_v56  ;;  %v1976_v3 = vor.u32 %v2520_v59, %v1973_v60 }
  0x85   : > { %966 = vmatpush.bf16.msrb.mxu0 %v2052_v4  ;;  %v2554_v1 = vld [vmem:[#allocation9 + $0x114] sm:$0xf0]  ;;  %v2104_v4 = vor.u32 %v2552_v62, %v2101_v63  ;;  %v2643_v6 = vld [vmem:[#allocation12 + $0x1e4] sm:$0xf]  ;;  %v2334_v12 = vld [vmem:[#allocation12 + $0xe0] sm:$0xf] }
  0x86   : > { %992 = vmatpush.bf16.msrb.mxu2 %v2056_v5  ;;  %v2100_v5 = vor.u32 %v2554_v1, %v2099_v0  ;;  %v2639_v9 = vld [vmem:[#allocation12 + $0x1c4] sm:$0xf]  ;;  %v2448_v10 = vld [vmem:[#allocation12 + $0x1d0] sm:$0xf0]  ;;  %v2613_v13 = vld [vmem:[#allocation12 + $0xec] sm:$0xf0] }
  0x87   : > { %1005 = vmatpush.bf16.msrb.mxu3 %v2184_v7  ;;  %979 = vmatpush.bf16.msrb.mxu1 %v2180_v11  ;;  %v2464_v7 = vld [vmem:[#allocation12 + $0x1f0] sm:$0xf0]  ;;  %v2451_v11 = vor.u32 %v2639_v9, %v2448_v10  ;;  %v2611_v14 = vld [vmem:[#allocation12 + $0xe4] sm:$0xf]  ;;  %v3433_v15 = vld [vmem:[#allocation11] sm:$0xf] }
  0x88   : > { %v2467_v8 = vor.u32 %v2643_v6, %v2464_v7  ;;  %v2462_v18 = vld [vmem:[#allocation12 + $0x1e0] sm:$0xf]  ;;  %v2635_v20 = vld [vmem:[#allocation12 + $0x1a4] sm:$0xf]  ;;  %v2432_v22 = vld [vmem:[#allocation12 + $0x1b0] sm:$0xf0] }
  0x89   : > { %967 = vmatpush.bf16.msrb.mxu0 %v2036_v16  ;;  %v2335_v16 = vor.u32 %v2613_v13, %v2334_v12  ;;  %v2318_v24 = vld [vmem:[#allocation12 + $0xc0] sm:$0xf]  ;;  %v2609_v25 = vld [vmem:[#allocation12 + $0xcc] sm:$0xf0]  ;;  %v2607_v26 = vld [vmem:[#allocation12 + $0xc4] sm:$0xf] }
  0x8a   : > { %993 = vmatpush.bf16.msrb.mxu2 %v2040_v17  ;;  %v2336_v17 = vld [vmem:[#allocation12 + $0xf0] sm:$0xf0]  ;;  %v2319_v27 = vor.u32 %v2609_v25, %v2318_v24  ;;  %v2446_v30 = vld [vmem:[#allocation12 + $0x1c0] sm:$0xf]  ;;  %v2631_v32 = vld [vmem:[#allocation12 + $0x184] sm:$0xf] }
  0x8b   : > { %1006 = vmatpush.bf16.msrb.mxu3 %v2168_v19  ;;  %980 = vmatpush.bf16.msrb.mxu1 %v2164_v23  ;;  %v2645_v19 = vld [vmem:[#allocation12 + $0x1ec] sm:$0xf0]  ;;  %v2435_v23 = vor.u32 %v2635_v20, %v2432_v22  ;;  %v2302_v38 = vld [vmem:[#allocation12 + $0xa0] sm:$0xf]  ;;  %v2304_v44 = vld [vmem:[#allocation12 + $0xb0] sm:$0xf0] }
  0x8c   : > { %v2463_v21 = vor.u32 %v2645_v19, %v2462_v18  ;;  %v2605_v39 = vld [vmem:[#allocation12 + $0xac] sm:$0xf0]  ;;  %v2627_v50 = vld [vmem:[#allocation12 + $0x164] sm:$0xf]  ;;  %v2400_v52 = vld [vmem:[#allocation12 + $0x170] sm:$0xf0] }
  0x8d   : > { %968 = vmatpush.bf16.msrb.mxu0 %v2020_v28  ;;  %v2320_v28 = vld [vmem:[#allocation12 + $0xd0] sm:$0xf0]  ;;  %v2637_v48 = vld [vmem:[#allocation12 + $0x1ac] sm:$0xf0]  ;;  %v2403_v56 = vor.u32 %v2627_v50, %v2400_v52  ;;  %v2599_v62 = vld [vmem:[#allocation12 + $0x84] sm:$0xf] }
  0x8e   : > { %994 = vmatpush.bf16.msrb.mxu2 %v2024_v29  ;;  %v2323_v29 = vor.u32 %v2607_v26, %v2320_v28  ;;  %v2601_v58 = vld [vmem:[#allocation12 + $0x8c] sm:$0xf0]  ;;  %v2288_v63 = vld [vmem:[#allocation12 + $0x90] sm:$0xf0]  ;;  %v2414_v1 = vld [vmem:[#allocation12 + $0x180] sm:$0xf] }
  0x8f   : > { %1007 = vmatpush.bf16.msrb.mxu3 %v2152_v31  ;;  %981 = vmatpush.bf16.msrb.mxu1 %v2148_v35  ;;  %v2641_v31 = vld [vmem:[#allocation12 + $0x1cc] sm:$0xf0]  ;;  %v2416_v35 = vld [vmem:[#allocation12 + $0x190] sm:$0xf0]  ;;  %v2291_v0 = vor.u32 %v2599_v62, %v2288_v63  ;;  %v2270_v9 = vld [vmem:[#allocation12 + $0x60] sm:$0xf] }
  0x90   : > { %v2447_v34 = vor.u32 %v2641_v31, %v2446_v30  ;;  %v2419_v37 = vor.u32 %v2631_v32, %v2416_v35  ;;  %v2384_v7 = vld [vmem:[#allocation12 + $0x150] sm:$0xf0]  ;;  %v2597_v10 = vld [vmem:[#allocation12 + $0x6c] sm:$0xf0]  ;;  %v2619_v19 = vld [vmem:[#allocation12 + $0x124] sm:$0xf] }
  0x91   : > { %969 = vmatpush.bf16.msrb.mxu0 %v2004_v40  ;;  %v2603_v40 = vld [vmem:[#allocation12 + $0xa4] sm:$0xf]  ;;  %v2629_v18 = vld [vmem:[#allocation12 + $0x16c] sm:$0xf0]  ;;  %v2254_v24 = vld [vmem:[#allocation12 + $0x40] sm:$0xf] }
  0x92   : > { %995 = vmatpush.bf16.msrb.mxu2 %v2008_v41  ;;  %v585_v41 = vperm.slane %v3433_v15, 1  ;;  %v2307_v46 = vor.u32 %v2603_v40, %v2304_v44  ;;  %v2593_v25 = vld [vmem:[#allocation12 + $0x4c] sm:$0xf0]  ;;  %v2591_v26 = vld [vmem:[#allocation12 + $0x44] sm:$0xf] }
  0x93   : > { %1008 = vmatpush.bf16.msrb.mxu3 %v2136_v43  ;;  %982 = vmatpush.bf16.msrb.mxu1 %v2132_v47  ;;  %v2303_v43 = vor.u32 %v2605_v39, %v2302_v38  ;;  %v2430_v47 = vld [vmem:[#allocation12 + $0x1a0] sm:$0xf]  ;;  %v2256_v30 = vld [vmem:[#allocation12 + $0x50] sm:$0xf0]  ;;  %v2644_v38 = vld [vmem:[#allocation12 + $0x1ec] sm:$0xf] }
  0x94   : > { %v2431_v51 = vor.u32 %v2637_v48, %v2430_v47  ;;  %v2259_v31 = vor.u32 %v2591_v26, %v2256_v30  ;;  %v2382_v32 = vld [vmem:[#allocation12 + $0x140] sm:$0xf]  ;;  %v2352_v35 = vld [vmem:[#allocation12 + $0x110] sm:$0xf0]  ;;  %v2472_v39 = vld [vmem:[#allocation12 + $0x1f8] sm:$0xf0] }
  0x95   : > { %970 = vmatpush.bf16.msrb.mxu0 %v1988_v54  ;;  %v2238_v40 = vld [vmem:[#allocation12 + $0x20] sm:$0xf]  ;;  %v2587_v44 = vld [vmem:[#allocation12 + $0x24] sm:$0xf]  ;;  %v2240_v48 = vld [vmem:[#allocation12 + $0x30] sm:$0xf0] }
  0x96   : > { %996 = vmatpush.bf16.msrb.mxu2 %v1992_v55  ;;  %v2366_v50 = vld [vmem:[#allocation12 + $0x120] sm:$0xf]  ;;  %v2621_v52 = vld [vmem:[#allocation12 + $0x12c] sm:$0xf0]  ;;  %v2583_v63 = vld [vmem:[#allocation12 + $0x4] sm:$0xf] }
  0x97   : > { %1009 = vmatpush.bf16.msrb.mxu3 %v2120_v57  ;;  %983 = vmatpush.bf16.msrb.mxu1 %v2116_v61  ;;  %v2286_v57 = vld [vmem:[#allocation12 + $0x80] sm:$0xf]  ;;  %v2585_v62 = vld [vmem:[#allocation12 + $0xc] sm:$0xf0]  ;;  %v2326_v26 = vld [vmem:[#allocation12 + $0xc8] sm:$0xf] }
  0x98   : > { %v2287_v61 = vor.u32 %v2601_v58, %v2286_v57  ;;  %v2222_v58 = vld [vmem:[#allocation12] sm:$0xf] }
  0x99   : > { %971 = vmatpush.bf16.msrb.mxu0 %v1972_v2  ;;  %v2633_v2 = vld [vmem:[#allocation12 + $0x18c] sm:$0xf0] }
  0x9a   : > { %997 = vmatpush.bf16.msrb.mxu2 %v1976_v3  ;;  %v2623_v3 = vld [vmem:[#allocation12 + $0x144] sm:$0xf]  ;;  %v2415_v6 = vor.u32 %v2633_v2, %v2414_v1 }
  0x9b   : > { %1010 = vmatpush.bf16.msrb.mxu3 %v2104_v4  ;;  %984 = vmatpush.bf16.msrb.mxu1 %v2100_v5 }
  0x9c   : > { %972 = vmatmul.bf16.vlgmr.msrb.gmra.mxu0 %v3421_v49 }
  0x9d   : > { %998 = vmatmul.bf16.vlgmr.msrb.gmra.mxu2 %v3421_v49  ;;  %v2339_v49 = vor.u32 %v2611_v14, %v2336_v17  ;;  %1481 = vmatpush.bf16.msra.mxu0 %v2335_v16  ;;  %v2271_v14 = vor.u32 %v2597_v10, %v2270_v9  ;;  %v2272_v16 = vld [vmem:[#allocation12 + $0x70] sm:$0xf0]  ;;  %v2612_v10 = vld [vmem:[#allocation12 + $0xec] sm:$0xf] }
  0x9e   : > { %1011 = vmatmul.bf16.vlgmr.msrb.gmra.mxu3 %v3423_v53  ;;  %985 = vmatmul.bf16.vlgmr.msrb.gmra.mxu1 %v3423_v53  ;;  %v584_v53 = vperm.slane %v3433_v15, 0 }
  0x9f   : > { %1520 = vmatpush.bf16.msra.mxu3 %v2467_v8  ;;  %1507 = vmatpush.bf16.msra.mxu2 %v2339_v49  ;;  %v2387_v8 = vor.u32 %v2623_v3, %v2384_v7  ;;  %v2398_v49 = vld [vmem:[#allocation12 + $0x160] sm:$0xf]  ;;  %v587_v3 = vperm.slane %v3433_v15, 3  ;;  %v2223_v7 = vor.u32 %v2585_v62, %v2222_v58  ;;  %v2628_v62 = vld [vmem:[#allocation12 + $0x16c] sm:$0xf] }
  0xa0   : > { %1494 = vmatpush.bf16.msra.mxu1 %v2463_v21  ;;  %v2399_v20 = vor.u32 %v2629_v18, %v2398_v49  ;;  %v2617_v49 = vld [vmem:[#allocation12 + $0x10c] sm:$0xf0]  ;;  %v2406_v18 = vld [vmem:[#allocation12 + $0x168] sm:$0xf] }
  0xa1   : > { %1482 = vmatpush.bf16.msra.mxu0 %v2319_v27 }
  0xa3   : > { %1521 = vmatpush.bf16.msra.mxu3 %v2451_v11  ;;  %1508 = vmatpush.bf16.msra.mxu2 %v2323_v29  ;;  %v2595_v11 = vld [vmem:[#allocation12 + $0x64] sm:$0xf]  ;;  %v2255_v29 = vor.u32 %v2593_v25, %v2254_v24  ;;  %v2440_v25 = vld [vmem:[#allocation12 + $0x1b8] sm:$0xf0] }
  0xa4   : > { %1495 = vmatpush.bf16.msra.mxu1 %v2447_v34  ;;  %v2275_v17 = vor.u32 %v2595_v11, %v2272_v16  ;;  %v2615_v34 = vld [vmem:[#allocation12 + $0x104] sm:$0xf]  ;;  %v2344_v11 = vld [vmem:[#allocation12 + $0xf8] sm:$0xf0] }
  0xa5   : > { %1483 = vmatpush.bf16.msra.mxu0 %v2303_v43  ;;  %v2589_v43 = vld [vmem:[#allocation12 + $0x2c] sm:$0xf0]  ;;  %v2347_v16 = vor.u32 %v2612_v10, %v2344_v11  ;;  %v2600_v10 = vld [vmem:[#allocation12 + $0x8c] sm:$0xf]  ;;  %v2296_v11 = vld [vmem:[#allocation12 + $0x98] sm:$0xf0] }
  0xa6   : > { %v2239_v47 = vor.u32 %v2589_v43, %v2238_v40  ;;  %v2642_v40 = vld [vmem:[#allocation12 + $0x1d4] sm:$0xf0] }
  0xa7   : > { %1522 = vmatpush.bf16.msra.mxu3 %v2435_v23  ;;  %1509 = vmatpush.bf16.msra.mxu2 %v2307_v46 }
  0xa8   : > { %1496 = vmatpush.bf16.msra.mxu1 %v2431_v51  ;;  %v2243_v51 = vor.u32 %v2587_v44, %v2240_v48  ;;  %v1147_v48 = vld [vmem:[#allocation6 + $0x8] sm:$0xff] }
  0xa9   : > { %1484 = vmatpush.bf16.msra.mxu0 %v2287_v61 }
  0xab   : > { %1523 = vmatpush.bf16.msra.mxu3 %v2419_v37  ;;  %1510 = vmatpush.bf16.msra.mxu2 %v2291_v0  ;;  %v2355_v37 = vor.u32 %v2615_v34, %v2352_v35  ;;  %v2224_v0 = vld [vmem:[#allocation12 + $0x10] sm:$0xf0]  ;;  %v2454_v34 = vld [vmem:[#allocation12 + $0x1c8] sm:$0xf]  ;;  %v2630_v35 = vld [vmem:[#allocation12 + $0x174] sm:$0xf0] }
  0xac   : > { %1497 = vmatpush.bf16.msra.mxu1 %v2415_v6 }
  0xad   : > { %1485 = vmatpush.bf16.msra.mxu0 %v2271_v14  ;;  %v2392_v14 = vld [vmem:[#allocation12 + $0x158] sm:$0xf0] }
  0xaf   : > { %1524 = vmatpush.bf16.msra.mxu3 %v2403_v56  ;;  %1511 = vmatpush.bf16.msra.mxu2 %v2275_v17  ;;  %v586_v56 = vperm.slane %v3433_v15, 2  ;;  %v2350_v17 = vld [vmem:[#allocation12 + $0x100] sm:$0xf] }
  0xb0   : > { %1498 = vmatpush.bf16.msra.mxu1 %v2399_v20  ;;  %v2470_v20 = vld [vmem:[#allocation12 + $0x1e8] sm:$0xf] }
  0xb1   : > { %1486 = vmatpush.bf16.msra.mxu0 %v2255_v29 }
  0xb3   : > { %1525 = vmatpush.bf16.msra.mxu3 %v2387_v8  ;;  %1512 = vmatpush.bf16.msra.mxu2 %v2259_v31  ;;  %v2227_v8 = vor.u32 %v2583_v63, %v2224_v0  ;;  %v3488_v63 = vpack.c.bf16 %v1147_v48, %v1147_v48 }
  0xb5   : > { %1487 = vmatpush.bf16.msra.mxu0 %v2239_v47  ;;  %v2310_v47 = vld [vmem:[#allocation12 + $0xa8] sm:$0xf] }
  0xb7   : > { %1513 = vmatpush.bf16.msra.mxu2 %v2243_v51 }
  0xb9   : > { %1488 = vmatpush.bf16.msra.mxu0 %v2223_v7 }
  0xbb   : > { %1514 = vmatpush.bf16.msra.mxu2 %v2227_v8 }
  0xbf   : > { %1559 = vmatpush.bf16.msrb.mxu2 %v2347_v16 }
  0xf9   : > { %v921_v33 = vpop.f32.mrf.mxu0 }
  0xfa   : > { %v922_v36 = vadd.f32 %v921_v33, %v584_v53  ;;  %v2368_v53 = vld [vmem:[#allocation12 + $0x130] sm:$0xf0]  ;;  %v2625_v33 = vld [vmem:[#allocation12 + $0x14c] sm:$0xf0] }
  0xfb   : > { %v2371_v23 = vor.u32 %v2619_v19, %v2368_v53  ;;  %v2351_v19 = vor.u32 %v2617_v49, %v2350_v17  ;;  %v2646_v53 = vld [vmem:[#allocation12 + $0x1f4] sm:$0xf0]  ;;  %v2299_v49 = vor.u32 %v2600_v10, %v2296_v11  ;;  %v2232_v10 = vld [vmem:[#allocation12 + $0x18] sm:$0xf0] }
  0xfc   : > { %v2471_v24 = vor.u32 %v2646_v53, %v2470_v20  ;;  %v2624_v20 = vld [vmem:[#allocation12 + $0x14c] sm:$0xf] }
  0xfd   : > { %v934_v42 = vpop.f32.mrf.mxu1  ;;  %1526 = vmatpush.bf16.msra.mxu3 %v2371_v23 }
  0xfe   : > { %v935_v45 = vadd.f32 %v934_v42, %v922_v36  ;;  %v2383_v36 = vor.u32 %v2625_v33, %v2382_v32  ;;  %v2475_v42 = vor.u32 %v2644_v38, %v2472_v39  ;;  %v2608_v32 = vld [vmem:[#allocation12 + $0xcc] sm:$0xf]  ;;  %v2328_v33 = vld [vmem:[#allocation12 + $0xd8] sm:$0xf0]  ;;  %v2407_v38 = vor.u32 %v2630_v35, %v2406_v18 }
  0xff   : > { %v2331_v39 = vor.u32 %v2608_v32, %v2328_v33  ;;  %v2280_v32 = vld [vmem:[#allocation12 + $0x78] sm:$0xf0] }
 0x100   : > { %v947_v54 = vpop.f32.mrf.mxu2  ;;  %v2217_v55 = vmul.f32 -1.442695, %v935_v45  ;;  %1499 = vmatpush.bf16.msra.mxu1 %v2383_v36 }
 0x101   : > { %v948_v59 = vadd.f32 %v947_v54, %v585_v41  ;;  %v960_v60 = vpop.f32.mrf.mxu3  ;;  %v923_v5 = vpop.f32.mrf.mxu0  ;;  %1527 = vmatpush.bf16.msra.mxu3 %v2355_v37  ;;  %v2640_v54 = vld [vmem:[#allocation12 + $0x1cc] sm:$0xf]  ;;  %1560 = vmatpush.bf16.msrb.mxu2 %v2331_v39  ;;  %v2262_v39 = vld [vmem:[#allocation12 + $0x48] sm:$0xf] }
 0x102   : > { %2785 = vpow2.f32 %v2217_v55  ;;  %v2456_v55 = vld [vmem:[#allocation12 + $0x1d8] sm:$0xf0]  ;;  %v2614_v5 = vld [vmem:[#allocation12 + $0xf4] sm:$0xf0] }
 0x103   : > { %v961_v4 = vadd.f32 %v960_v60, %v948_v59  ;;  %v2367_v60 = vor.u32 %v2621_v52, %v2366_v50  ;;  %v2459_v61 = vor.u32 %v2640_v54, %v2456_v55  ;;  %v2606_v52 = vld [vmem:[#allocation12 + $0xb4] sm:$0xf0]  ;;  %v2604_v54 = vld [vmem:[#allocation12 + $0xac] sm:$0xf]  ;;  %v2312_v55 = vld [vmem:[#allocation12 + $0xb8] sm:$0xf0] }
 0x104   : > { %v2315_v58 = vor.u32 %v2604_v54, %v2312_v55  ;;  %1528 = vmatmul.bf16.vlgmr.msra.gmra.mxu3 %v3488_v63  ;;  %v2360_v54 = vld [vmem:[#allocation12 + $0x118] sm:$0xf0]  ;;  %v2246_v55 = vld [vmem:[#allocation12 + $0x28] sm:$0xf] }
 0x105   : > { %v2218_v12 = vmul.f32 -1.442695, %v961_v4  ;;  %v936_v13 = vpop.f32.mrf.mxu1  ;;  %1572 = vmatpush.bf16.msrb.mxu3 %v2475_v42  ;;  %v2342_v4 = vld [vmem:[#allocation12 + $0xe8] sm:$0xf]  ;;  %1500 = vmatpush.bf16.msra.mxu1 %v2367_v60 }
 0x106   : > { %v2343_v9 = vor.u32 %v2614_v5, %v2342_v4  ;;  %v2438_v60 = vld [vmem:[#allocation12 + $0x1a8] sm:$0xf]  ;;  %v2602_v5 = vld [vmem:[#allocation12 + $0x94] sm:$0xf0]  ;;  %1561 = vmatpush.bf16.msrb.mxu2 %v2315_v58 }
 0x107   : > { %2787 = vpow2.f32 %v2218_v12  ;;  %v2294_v4 = vld [vmem:[#allocation12 + $0x88] sm:$0xf] }
 0x108   : > { %v2786_v21 = vpop.eup %2785  ;;  %v949_v22 = vpop.f32.mrf.mxu2  ;;  %1533 = vmatpush.bf16.msrb.mxu0 %v2343_v9  ;;  %v2295_v17 = vor.u32 %v2602_v5, %v2294_v4 }
 0x109   : > { %v3437_v27 = vadd.f32 1.0, %v2786_v21  ;;  %v962_v28 = vpop.f32.mrf.mxu3  ;;  %1573 = vmatpush.bf16.msrb.mxu3 %v2459_v61  ;;  %v2636_v21 = vld [vmem:[#allocation12 + $0x1ac] sm:$0xf]  ;;  %1501 = vmatpush.bf16.msra.mxu1 %v2351_v19  ;;  %v2638_v61 = vld [vmem:[#allocation12 + $0x1b4] sm:$0xf0] }
 0x10a   : > { %v2443_v30 = vor.u32 %v2636_v21, %v2440_v25  ;;  %v2439_v0 = vor.u32 %v2638_v61, %v2438_v60  ;;  %v2634_v19 = vld [vmem:[#allocation12 + $0x194] sm:$0xf0]  ;;  %v580_v21 = vld [vmem:[#allocation8] sm:$0xff]  ;;  %1562 = vmatpush.bf16.msrb.mxu2 %v2299_v49  ;;  %v2248_v60 = vld [vmem:[#allocation12 + $0x38] sm:$0xf0] }
 0x10b   : > { %2789 = vrcp.f32 %v3437_v27  ;;  %v1031_v46 = vand.u32 2147483648, %v3437_v27  ;;  %v1029_v57 = vand.u32 2147483647, %v3437_v27  ;;  %vm1025_vm0 = vweird.f32 %v3437_v27 }
 0x10c   : > { %1502 = vmatmul.bf16.vlgmr.msra.gmra.mxu1 %v3488_v63 }
 0x10d   : > { %v2788_v41 = vpop.eup %2787  ;;  %v3452_v2 = vor.u32 1.1754944e-38, %v1031_v46  ;;  %vm3466_vm4 = vcmp.eq.f32.partialorder %v1029_v57, 8.507059e+37  ;;  %1546 = vmatpush.bf16.msrb.mxu1 %v2471_v24  ;;  %1574 = vmatpush.bf16.msrb.mxu3 %v2443_v30  ;;  %v2424_v46 = vld [vmem:[#allocation12 + $0x198] sm:$0xf0]  ;;  %v2311_v57 = vor.u32 %v2606_v52, %v2310_v47  ;;  %v2626_v47 = vld [vmem:[#allocation12 + $0x154] sm:$0xf0] }
 0x10e   : > { %v3440_v45 = vadd.f32 1.0, %v2788_v41  ;;  %v2632_v41 = vld [vmem:[#allocation12 + $0x18c] sm:$0xf] }
 0x10f   : > { %v2427_v51 = vor.u32 %v2632_v41, %v2424_v46  ;;  %v2592_v41 = vld [vmem:[#allocation12 + $0x4c] sm:$0xf]  ;;  %v2390_v46 = vld [vmem:[#allocation12 + $0x148] sm:$0xf] }
 0x110   : > { %2791 = vrcp.f32 %v3440_v45  ;;  %v1048_v6 = vand.u32 2147483647, %v3440_v45  ;;  %v1050_v12 = vand.u32 2147483648, %v3440_v45  ;;  %vm1044_vm3 = vweird.f32 %v3440_v45  ;;  %v2616_v52 = vld [vmem:[#allocation12 + $0x10c] sm:$0xf] }
 0x111   : > { %v3446_v59 = vpop.eup %2789  ;;  %1575 = vmatpush.bf16.msrb.mxu3 %v2427_v51  ;;  %v2391_v58 = vor.u32 %v2626_v47, %v2390_v46  ;;  %v2363_v61 = vor.u32 %v2616_v52, %v2360_v54 }
 0x112   : > { %v1021_v1 = vmul.f32 %v3446_v59, %v3437_v27  ;;  %vm1026_vm1 = vweird.f32 %v3446_v59  ;;  %v2610_v27 = vld [vmem:[#allocation12 + $0xd4] sm:$0xf0]  ;;  %v1051_v36 = vor.u32 1.1754944e-38, %v1050_v12  ;;  %vm3482_vm7 = vcmp.eq.f32.partialorder %v1048_v6, 8.507059e+37  ;;  %v2422_v12 = vld [vmem:[#allocation12 + $0x188] sm:$0xf] }
 0x113   : > { %vm3461_vm2 = vmor %vm1025_vm0, %vm1026_vm1  ;;  %v2327_v31 = vor.u32 %v2610_v27, %v2326_v26  ;;  %v2423_v24 = vor.u32 %v2634_v19, %v2422_v12  ;;  %v2395_v26 = vor.u32 %v2624_v20, %v2392_v14  ;;  %v2598_v27 = vld [vmem:[#allocation12 + $0x74] sm:$0xf0]  ;;  %v2358_v12 = vld [vmem:[#allocation12 + $0x108] sm:$0xf] }
 0x114   : > { %v1022_v13 = vsub.f32 1.0, %v1021_v1  ;;  %v2408_v1 = vld [vmem:[#allocation12 + $0x178] sm:$0xf0] }
 0x115   : > { %1534 = vmatpush.bf16.msrb.mxu0 %v2327_v31  ;;  %v2411_v9 = vor.u32 %v2628_v62, %v2408_v1  ;;  %v2374_v62 = vld [vmem:[#allocation12 + $0x128] sm:$0xf] }
 0x116   : > { %v3470_v22 = vpop.eup %2791  ;;  %v1023_v23 = vmul.f32 %v3446_v59, %v1022_v13 }
 0x117   : > { %v1040_v28 = vmul.f32 %v3470_v22, %v3440_v45  ;;  %vm1045_vm5 = vweird.f32 %v3470_v22  ;;  %v2455_v45 = vor.u32 %v2642_v40, %v2454_v34  ;;  %1576 = vmatpush.bf16.msrb.mxu3 %v2411_v9  ;;  %v2594_v40 = vld [vmem:[#allocation12 + $0x54] sm:$0xf0]  ;;  %v2584_v9 = vld [vmem:[#allocation12 + $0xc] sm:$0xf] }
 0x118   : > { %vm3478_vm6 = vmor %vm1044_vm3, %vm1045_vm5  ;;  %v1024_v44 = vadd.f32 %v3446_v59, %v1023_v23 }
 0x119   : > { %v973_v29 = vpop.f32.mrf.mxu0  ;;  %v1041_v42 = vsub.f32 1.0, %v1040_v28  ;;  %1547 = vmatpush.bf16.msrb.mxu1 %v2455_v45  ;;  %1535 = vmatpush.bf16.msrb.mxu0 %v2311_v57  ;;  %v2596_v28 = vld [vmem:[#allocation12 + $0x6c] sm:$0xf]  ;;  %v2264_v45 = vld [vmem:[#allocation12 + $0x58] sm:$0xf0] }
 0x11a   : > { %v974_v37 = vadd.f32 %v973_v29, %v586_v56  ;;  %v1028_v6 = vsel %vm3461_vm2, %v3446_v59, %v1024_v44  ;;  %v2283_v34 = vor.u32 %v2596_v28, %v2280_v32  ;;  %v2267_v51 = vor.u32 %v2592_v41, %v2264_v45  ;;  %v2588_v57 = vld [vmem:[#allocation12 + $0x2c] sm:$0xf] }
 0x11b   : > { %v986_v43 = vpop.f32.mrf.mxu1  ;;  %v1042_v56 = vmul.f32 %v3470_v22, %v1041_v42  ;;  %v1033_v15 = vsel %vm3466_vm4, %v3452_v2, %v1028_v6  ;;  %1577 = vmatpush.bf16.msrb.mxu3 %v2395_v26  ;;  %v2251_v5 = vor.u32 %v2588_v57, %v2248_v60  ;;  %v2230_v6 = vld [vmem:[#allocation12 + $0x8] sm:$0xf]  ;;  %v1145_v32 = vld [vmem:[%s3616_s6] sm:$0xf] }
 0x11c   : > { %v987_v50 = vadd.f32 %v986_v43, %v974_v37  ;;  %v2376_v37 = vld [vmem:[#allocation12 + $0x138] sm:$0xf0]  ;;  %1563 = vmatpush.bf16.msrb.mxu2 %v2283_v34  ;;  %v1155_v52 = vperm.slane %v1145_v32, 2 }
 0x11d   : > { %v1043_v7 = vadd.f32 %v3470_v22, %v1042_v56  ;;  %1548 = vmatpush.bf16.msrb.mxu1 %v2439_v0  ;;  %1536 = vmatpush.bf16.msrb.mxu0 %v2295_v17  ;;  %v2590_v56 = vld [vmem:[#allocation12 + $0x34] sm:$0xf0]  ;;  %v2235_v17 = vor.u32 %v2584_v9, %v2232_v10 }
 0x11e   : > { %2793 = vtanh.f32 %v987_v50  ;;  %v2263_v50 = vor.u32 %v2594_v40, %v2262_v39  ;;  %v2622_v0 = vld [vmem:[#allocation12 + $0x134] sm:$0xf0]  ;;  %v2247_v4 = vor.u32 %v2590_v56, %v2246_v55 }
 0x11f   : > { %v1047_v59 = vsel %vm3478_vm6, %v3470_v22, %v1043_v7  ;;  %v2278_v22 = vld [vmem:[#allocation12 + $0x68] sm:$0xf]  ;;  %v2586_v7 = vld [vmem:[#allocation12 + $0x14] sm:$0xf0]  ;;  %v2375_v11 = vor.u32 %v2622_v0, %v2374_v62 }
 0x120   : > { %v999_v8 = vpop.f32.mrf.mxu2  ;;  %v2279_v31 = vor.u32 %v2598_v27, %v2278_v22  ;;  %1564 = vmatpush.bf16.msrb.mxu2 %v2267_v51 }
 0x121   : > { %v1000_v13 = vadd.f32 %v999_v8, %v587_v3  ;;  %v1012_v16 = vpop.f32.mrf.mxu3  ;;  %v975_v53 = vpop.f32.mrf.mxu0  ;;  %v1052_v3 = vsel %vm3482_vm7, %v1051_v36, %v1047_v59  ;;  %v2620_v36 = vld [vmem:[#allocation12 + $0x12c] sm:$0xf]  ;;  %1549 = vmatpush.bf16.msrb.mxu1 %v2423_v24 }
 0x122   : > { %v1074_v2 = vmul.f32 %v1052_v3, %v580_v21  ;;  %v2379_v44 = vor.u32 %v2620_v36, %v2376_v37  ;;  %1537 = vmatpush.bf16.msrb.mxu0 %v2279_v31  ;;  %v1154_v37 = vperm.slane %v1145_v32, 1 }
 0x123   : > { %v1013_v23 = vadd.f32 %v1012_v16, %v1000_v13  ;;  %v988_v25 = vpop.f32.mrf.mxu1  ;;  %v2618_v13 = vld [vmem:[#allocation12 + $0x114] sm:$0xf0]  ;;  %v2231_v16 = vor.u32 %v2586_v7, %v2230_v6 }
 0x124   : > { %v2794_v29 = vpop.eup %2793  ;;  %1578 = vmatpush.bf16.msrb.mxu3 %v2379_v44  ;;  %1565 = vmatpush.bf16.msrb.mxu2 %v2251_v5  ;;  %v2359_v49 = vor.u32 %v2618_v13, %v2358_v12 }
 0x125   : > { %v2219_v30 = vmul.f32 -1.442695, %v1013_v23  ;;  %v1075_v33 = vmul.f32 %v2794_v29, %v1033_v15  ;;  %1550 = vmatpush.bf16.msrb.mxu1 %v2407_v38 }
 0x126   : > { %1538 = vmatpush.bf16.msrb.mxu0 %v2263_v50  ;;  %v1156_v50 = vperm.slane %v1145_v32, 3 }
 0x127   : > { %2795 = vpow2.f32 %v2219_v30  ;;  %v1076_v42 = vadd.f32 %v1075_v33, %v1074_v2  ;;  %v1153_v2 = vperm.slane %v1145_v32, 0 }
 0x128   : > { %v1001_v43 = vpop.f32.mrf.mxu2  ;;  %1579 = vmatpush.bf16.msrb.mxu3 %v2363_v61  ;;  %1566 = vmatpush.bf16.msrb.mxu2 %v2235_v17 }
 0x129   : > { %v1014_v48 = vpop.f32.mrf.mxu3  ;;  %1080 = vst [vmem:[#allocation18] sm:$0xff] %v1076_v42  ;;  %1551 = vmatpush.bf16.msrb.mxu1 %v2391_v58 }
 0x12a   : > { %1539 = vmatpush.bf16.msrb.mxu0 %v2247_v4 }
 0x12b   : > { %1580 = vmatmul.bf16.vlgmr.msrb.gmra.mxu3 %v3488_v63 }
 0x12d   : > { %v2796_v1 = vpop.eup %2795  ;;  %1552 = vmatpush.bf16.msrb.mxu1 %v2375_v11 }
 0x12e   : > { %v1058_v8 = vadd.f32 1.0, %v2796_v1  ;;  %1540 = vmatpush.bf16.msrb.mxu0 %v2231_v16 }
 0x130   : > { %2797 = vrcp.f32 %v1058_v8  ;;  %v1070_v59 = vand.u32 2147483648, %v1058_v8  ;;  %v1068_v21 = vand.u32 2147483647, %v1058_v8  ;;  %vm1064_vm9 = vweird.f32 %v1058_v8 }
 0x131   : > { %1553 = vmatpush.bf16.msrb.mxu1 %v2359_v49  ;;  %2799 = vtanh.f32 %v1076_v42 }
 0x132   : > { %v1071_v3 = vor.u32 1.1754944e-38, %v1070_v59  ;;  %vm1069_vm11 = vcmp.eq.f32.partialorder %v1068_v21, 8.507059e+37 }
 0x134   : > { %1554 = vmatmul.bf16.vlgmr.msrb.gmra.mxu1 %v3488_v63 }
 0x136   : > { %v2798_v19 = vpop.eup %2797 }
 0x137   : > { %v1060_v20 = vmul.f32 %v2798_v19, %v1058_v8  ;;  %vm1065_vm8 = vweird.f32 %v2798_v19  ;;  %v2800_v24 = vpop.eup %2799 }
 0x138   : > { %vm1066_vm10 = vmor %vm1064_vm9, %vm1065_vm8 }
 0x139   : > { %v1061_v14 = vsub.f32 1.0, %v1060_v20 }
 0x13b   : > { %v1062_v53 = vmul.f32 %v2798_v19, %v1061_v14  ;;  %v1149_v14 = vld [vmem:[#allocation8 + $0x8] sm:$0xff] }
 0x13d   : > { %v1063_v15 = vadd.f32 %v2798_v19, %v1062_v53 }
 0x13f   : > { %v1067_v23 = vsel %vm1066_vm10, %v2798_v19, %v1063_v15 }
 0x140   : > { %v1072_v25 = vsel %vm1069_vm11, %v1071_v3, %v1067_v23 }
 0x141   : > { %v1078_v26 = vmul.f32 %v2800_v24, %v1072_v25 }
 0x143   : > { %1079 = vst [vmem:[#allocation16] sm:$0xff] %v1078_v26  ;;  %v1150_v22 = vpack.c.bf16 %v1078_v26, %v1078_v26 }
 0x145   : > { %1489 = vmatmul.bf16.vlgmr.msra.gmra.mxu0 %v1150_v22  ;;  %1515 = vmatmul.bf16.vlgmr.msra.gmra.mxu2 %v1150_v22 }
 0x155   : > { %1541 = vmatmul.bf16.vlgmr.msrb.gmra.mxu0 %v1150_v22  ;;  %1567 = vmatmul.bf16.vlgmr.msrb.gmra.mxu2 %v1150_v22 }
 0x187   : > { %v1529_v63 = vpop.f32.mrf.mxu3 }
 0x189   : > { %v1503_v27 = vpop.f32.mrf.mxu1 }
 0x18f   : > { %v1531_v29 = vpop.f32.mrf.mxu3 }
 0x191   : > { %v1505_v28 = vpop.f32.mrf.mxu1 }
 0x1ae   : > { %v1581_v30 = vpop.f32.mrf.mxu3 }
 0x1b1   : > { %v1555_v31 = vpop.f32.mrf.mxu1 }
 0x1b6   : > { %v1583_v18 = vpop.f32.mrf.mxu3 }
 0x1b9   : > { %v1557_v33 = vpop.f32.mrf.mxu1 }
 0x1c2   : > { %v1490_v34 = vpop.f32.mrf.mxu0 }
 0x1c3   : > { %v1491_v35 = vadd.f32 %v1490_v34, %v1153_v2 }
 0x1c5   : > { %v1504_v36 = vadd.f32 %v1503_v27, %v1491_v35 }
 0x1c7   : > { %v2476_v38 = vmul.f32 -1.442695, %v1504_v36 }
 0x1c8   : > { %v1516_v39 = vpop.f32.mrf.mxu2 }
 0x1c9   : > { %2801 = vpow2.f32 %v2476_v38  ;;  %v1517_v40 = vadd.f32 %v1516_v39, %v1154_v37 }
 0x1ca   : > { %v1492_v41 = vpop.f32.mrf.mxu0 }
 0x1cb   : > { %v1530_v42 = vadd.f32 %v1529_v63, %v1517_v40 }
 0x1cd   : > { %v2477_v43 = vmul.f32 -1.442695, %v1530_v42 }
 0x1cf   : > { %v2802_v44 = vpop.eup %2801  ;;  %2803 = vpow2.f32 %v2477_v43 }
 0x1d0   : > { %v1588_v45 = vadd.f32 1.0, %v2802_v44  ;;  %v1518_v46 = vpop.f32.mrf.mxu2 }
 0x1d2   : > { %2805 = vrcp.f32 %v1588_v45  ;;  %v1542_v47 = vpop.f32.mrf.mxu0  ;;  %v1600_v8 = vand.u32 2147483648, %v1588_v45  ;;  %vm1594_vm13 = vweird.f32 %v1588_v45  ;;  %v1598_v11 = vand.u32 2147483647, %v1588_v45 }
 0x1d3   : > { %v1543_v58 = vadd.f32 %v1542_v47, %v1155_v52 }
 0x1d4   : > { %v1601_v49 = vor.u32 1.1754944e-38, %v1600_v8  ;;  %vm1599_vm1 = vcmp.eq.f32.partialorder %v1598_v11, 8.507059e+37 }
 0x1d5   : > { %v2804_v48 = vpop.eup %2803  ;;  %v1556_v5 = vadd.f32 %v1555_v31, %v1543_v58 }
 0x1d6   : > { %v1607_v51 = vadd.f32 1.0, %v2804_v48 }
 0x1d8   : > { %v2806_v54 = vpop.eup %2805  ;;  %2807 = vrcp.f32 %v1607_v51  ;;  %v1568_v55 = vpop.f32.mrf.mxu2  ;;  %v1619_v12 = vand.u32 2147483648, %v1607_v51  ;;  %v1617_v17 = vand.u32 2147483647, %v1607_v51  ;;  %vm1613_vm0 = vweird.f32 %v1607_v51 }
 0x1d9   : > { %v1590_v56 = vmul.f32 %v2806_v54, %v1588_v45  ;;  %v1569_v57 = vadd.f32 %v1568_v55, %v1156_v50  ;;  %vm1595_vm12 = vweird.f32 %v2806_v54 }
 0x1da   : > { %v1544_v60 = vpop.f32.mrf.mxu0  ;;  %vm1596_vm14 = vmor %vm1594_vm13, %vm1595_vm12  ;;  %v1620_v53 = vor.u32 1.1754944e-38, %v1619_v12  ;;  %vm1618_vm3 = vcmp.eq.f32.partialorder %v1617_v17, 8.507059e+37 }
 0x1db   : > { %v1591_v61 = vsub.f32 1.0, %v1590_v56  ;;  %v1582_v62 = vadd.f32 %v1581_v30, %v1569_v57 }
 0x1dd   : > { %v1592_v0 = vmul.f32 %v2806_v54, %v1591_v61  ;;  %v2478_v1 = vmul.f32 -1.442695, %v1582_v62 }
 0x1de   : > { %v2808_v4 = vpop.eup %2807 }
 0x1df   : > { %v1609_v6 = vmul.f32 %v2808_v4, %v1607_v51  ;;  %v1593_v7 = vadd.f32 %v2806_v54, %v1592_v0  ;;  %2809 = vpow2.f32 %v2478_v1  ;;  %vm1614_vm15 = vweird.f32 %v2808_v4 }
 0x1e0   : > { %v1570_v9 = vpop.f32.mrf.mxu2  ;;  %2811 = vtanh.f32 %v1556_v5  ;;  %vm1615_vm2 = vmor %vm1613_vm0, %vm1614_vm15 }
 0x1e1   : > { %v1610_v10 = vsub.f32 1.0, %v1609_v6  ;;  %v1597_v16 = vsel %vm1596_vm14, %v2806_v54, %v1593_v7 }
 0x1e2   : > { %v1602_v59 = vsel %vm1599_vm1, %v1601_v49, %v1597_v16 }
 0x1e3   : > { %v1611_v13 = vmul.f32 %v2808_v4, %v1610_v10 }
 0x1e5   : > { %v2810_v19 = vpop.eup %2809  ;;  %v1612_v20 = vadd.f32 %v2808_v4, %v1611_v13 }
 0x1e6   : > { %v1627_v21 = vadd.f32 1.0, %v2810_v19  ;;  %v2812_v3 = vpop.eup %2811 }
 0x1e7   : > { %v1616_v15 = vsel %vm1615_vm2, %v2808_v4, %v1612_v20  ;;  %v1644_v25 = vmul.f32 %v2812_v3, %v1602_v59 }
 0x1e8   : > { %v1621_v23 = vsel %vm1618_vm3, %v1620_v53, %v1616_v15  ;;  %2813 = vrcp.f32 %v1627_v21  ;;  %v1639_v28 = vand.u32 2147483648, %v1627_v21  ;;  %v1637_v30 = vand.u32 2147483647, %v1627_v21 }
 0x1e9   : > { %v1643_v24 = vmul.f32 %v1621_v23, %v1149_v14  ;;  %vm1633_vm5 = vweird.f32 %v1627_v21 }
 0x1ea   : > { %v1640_v32 = vor.u32 1.1754944e-38, %v1639_v28  ;;  %vm1638_vm7 = vcmp.eq.f32.partialorder %v1637_v30, 8.507059e+37 }
 0x1eb   : > { %v1645_v26 = vadd.f32 %v1644_v25, %v1643_v24 }
 0x1ed   : > { %1651 = vst [vmem:[#allocation18 + $0x8] sm:$0xff] %v1645_v26  ;;  %2815 = vtanh.f32 %v1645_v26 }
 0x1ee   : > { %v2814_v22 = vpop.eup %2813 }
 0x1ef   : > { %v1629_v27 = vmul.f32 %v2814_v22, %v1627_v21  ;;  %vm1634_vm4 = vweird.f32 %v2814_v22 }
 0x1f0   : > { %vm1635_vm6 = vmor %vm1633_vm5, %vm1634_vm4 }
 0x1f1   : > { %v1630_v63 = vsub.f32 1.0, %v1629_v27 }
 0x1f3   : > { %v1631_v29 = vmul.f32 %v2814_v22, %v1630_v63  ;;  %v2816_v2 = vpop.eup %2815 }
 0x1f5   : > { %v1632_v31 = vadd.f32 %v2814_v22, %v1631_v29 }
 0x1f7   : > { %v1636_v18 = vsel %vm1635_vm6, %v2814_v22, %v1632_v31 }
 0x1f8   : > { %v1641_v33 = vsel %vm1638_vm7, %v1640_v32, %v1636_v18 }
 0x1f9   : > { %v1647_v34 = vmul.f32 %v2816_v2, %v1641_v33 }
 0x1fb   : > { %1649 = vst [vmem:[#allocation16 + $0x8] sm:$0xff] %v1647_v34 }
 0x1fc   : > { %1652 = vst [vmem:[#allocation2] sm:$0xff] %v1647_v34 }
 0x1fd PF: > { %v2654_v35 = vld [vmem:[%s3402_s30 + $0x38] sm:$0xff]  ;;  %v2653_v36 = vld [vmem:[%s3402_s30 + $0x30] sm:$0xff]  ;;  %v2652_v37 = vld [vmem:[%s3402_s30 + $0x28] sm:$0xff]  ;;  %s1763_s16 = sshll.u32 %s3582_s10, 4  ;;  %s3185_s2 = smov [#allocation16]   ;;  %s1764_s16 = int_to_ptr.hbm [resolvable:$true] %s1763_s16 }
 0x1fe   : > { %1723 = vmatpush.bf16.msra.mxu0 %v2654_v35  ;;  %v2651_v38 = vld [vmem:[%s3402_s30 + $0x20] sm:$0xff]  ;;  %v2650_v39 = vld [vmem:[%s3402_s30 + $0x18] sm:$0xff]  ;;  %v2649_v40 = vld [vmem:[%s3402_s30 + $0x10] sm:$0xff]  ;;  %s1761_s4 = sshll.u32 %s3185_s2, 4  ;;  %s3186_s25 = smov 128   ;;  %s1762_s4 = int_to_ptr.vmem [resolvable:$true] %s1761_s4 }
 0x1ff   : > { %v2648_v41 = vld [vmem:[%s3402_s30 + $0x8] sm:$0xff]  ;;  %v2647_v42 = vld [vmem:[%s3402_s30] sm:$0xff]  ;;  %s3187_s14 = smov 8   ;;  %p3617_p4 = scmp.eq.s32.totalorder %s3273_s24, 2 }
 0x200   : > { %s1777_s28 = sshll.u32 %s3583_s11, 4  ;;  %s3188_s9 = smov [#allocation18]   ;;  %s1778_s28 = int_to_ptr.hbm [resolvable:$true] %s1777_s28 }
 0x201   : > { %2683 = dma.vmem_to_hbm [thread:$0]  (%p3617_p4), %s1762_s4, 256, %s1764_s16, [#allocation17], %s3186_s25, %s3186_s25, %s3187_s14  }
 0x202   : > { %1724 = vmatpush.bf16.msra.mxu0 %v2653_v36  ;;  %s1775_s27 = sshll.u32 %s3188_s9, 4  ;;  %p3618_p12 = pmov %p3617_p4  ;;  %s1776_s27 = int_to_ptr.vmem [resolvable:$true] %s1775_s27 }
 0x203   : > { %v1653_v43 = vld [vmem:[#allocation2] sm:$0xff]  ;;  %s2512_s12 = sshll.u32 %s3273_s24, 3  ;;  %s3619_s29 = sld [smem:[#allocation33_spill]] }
 0x204   : > { %v1654_v44 = vpack.c.bf16 %v1653_v43, %v1653_v43  ;;  %2685 = dma.vmem_to_hbm [thread:$0]  (%p3618_p12), %s1776_s27, 256, %s1778_s28, [#allocation17], %s3186_s25, %s3186_s25, %s3187_s14  }
 0x205   : > { %s3620_s4 = scalar_lea.vmem %s3580_s8, %s3411_s1  ;;  %s1750_s30 = sshll.u32 %s3417_s22, 4  ;;  %s1751_s30 = int_to_ptr.vmem [resolvable:$true] %s1750_s30 }
 0x206   : > { %1725 = vmatpush.bf16.msra.mxu0 %v2652_v37  ;;  %v2817_v45 = vld [vmem:[%s3620_s4] ss:$0 sm:$0xff]  ;;  %s1738_s9 = scalar_lea.sflag [#allocation5], %s3399_s3 }
 0x209   : > { %s1748_s5 = scalar_lea.hbm %s3619_s29, %s2512_s12  ;;  %s3104_s6 = scalar_lea.hbm %s3619_s29, 24 }
 0x20a   : > { %1726 = vmatpush.bf16.msra.mxu0 %v2651_v38  ;;  %s1752_s26 = sshll.u32 %s1748_s5, 4  ;;  %s1753_s26 = int_to_ptr.hbm [resolvable:$true] %s1752_s26 }
 0x20b   : > { %s3098_s25 = sshra.s32 %s1753_s26, 4  ;;  %s3099_s25 = int_to_ptr.hbm [resolvable:$true] %s3098_s25 }
 0x20c   : > { %s3100_s14 = scalar_lea.hbm %s3099_s25, 8  ;;  %p3105_p9 = scmp.lt.s32.totalorder %s3099_s25, %s3619_s29 }
 0x20d   : > { %p3101_p13 = scmp.ne.s32.totalorder %s3099_s25, %s3100_s14  ;;  %p3106_p10 = scmp.lt.s32.totalorder %s3104_s6, %s3100_s14 }
 0x20e   : > { %1727 = vmatpush.bf16.msra.mxu0 %v2650_v39 }
 0x20f   : > { %p3102_p7 = pnand %p3101_p13, %p3348_p5  ;;  %p3107_p0 = por %p3106_p10, %p3105_p9 }
 0x211   : > { %p3103_p8 = pneg %p3102_p7 }
 0x212   : > { %1728 = vmatpush.bf16.msra.mxu0 %v2649_v40 }
 0x213   : > { %p3108_p11 = pnand %p3107_p0, %p3103_p8 }
 0x216   : > { %1729 = vmatpush.bf16.msra.mxu0 %v2648_v41 }
 0x21a   : > { %1730 = vmatpush.bf16.msra.mxu0 %v2647_v42 }
 0x21d   : > { %1731 = vmatmul.bf16.vlgmr.msra.gmra.mxu0 %v1654_v44 }
 0x29a   : > { %v1732_v46 = vpop.f32.mrf.mxu0 }
 0x29b   : > { %v1733_v47 = vadd.f32 %v2817_v45, %v1732_v46 }
 0x29d   : > { %1736 = vst [vmem:[%s3417_s22] sm:$0xff] %v1733_v47 }
 0x29e   : > { %3111 = shalt.err (!%p3108_p11)
}
 0x29f   : > { %2681 = dma.vmem_to_hbm [thread:$0]  (%p3348_p5), %s1751_s30, 128, %s1753_s26, %s1738_s9  }
 0x2a0   : > { %p3621_p2 = pmov %p3617_p4 }
 0x2a2   : > { %v1734_v48 = vpop.f32.mrf.mxu0 }
 0x2a3   : > { %3149 = dma.done.wait (%p3621_p2), [#allocation17], 512   ;;  %p3622_p1 = pmov %p3621_p2 }
 0x2a5   : > { %3151 = vsyncadd (%p3622_p1), [#allocation17], 4294966784 }
 0x2a6 PF: > { %p2735_p3 = scmp.ge.s32.totalorder %s3170_s20, 2  ;;  %s1802_s5 = sand.u32 1, %s3158_s17  }
 0x2a7   : > { %s1803_s3 = scalar_lea.sflag [#allocation5], %s1802_s5 }
 0x2a8   : > { %p2715_p4 = pnand %p2735_p3, %p3352_p6 }
 0x2aa   : > { %p2716_p12 = pneg %p2715_p4 }
 0x2ac   : > { %3153 = dma.done.wait (%p2716_p12), %s1803_s3, 128  }
 0x2ad   : > { %3155 = vsyncadd (%p2716_p12), %s1803_s3, 4294967168  ;;  %p27_p5 = scmp.ge.s32.totalorder %s3320_s13, 5   ;;  %s3623_s17 = smov %s3162_s18 }
 0x2ae   : > { %s3624_s18 = smov %s3166_s19  ;;  %s3625_s19 = smov %s3331_s21 }
 0x2af   : > { %s3626_s20 = smov %s3320_s13  ;;  %29 = sbr.rel (!%p27_p5) target bundleno = 17 (0x11), region = 151 }
 0x2b4   :  { %1809 = vsyncpa [#allocation4], 1 }
 0x2b5   :  { %1811 = vsyncpa [#allocation4 + $0x1], 1 }
 0x2b6   :  { %1812 = vsyncpa [#allocation7], 1 }
 0x2b7   :  { %1813 = vsyncpa [#allocation10], 1 }
 0x2b8   :  { %1814 = vsyncpa [#allocation13], 1 }
 0x2b9   :  { %1815 = vsyncpa [#allocation5], 1 }
 0x2ba   :  { %1817 = vsyncpa [#allocation5 + $0x1], 1 }
 0x2bb   :  { %1818 = vsyncpa [#allocation17], 1 }

</bundles_post_ra>
